<compile_context>
chip_gen: v7x
topology: tpu7x:2x2x1
jax: 0.10.0
libtpu: 0.0.40
codegen_flags: <defaults>
</compile_context>

<pallas_src>
import jax
import jax.numpy as jnp
import numpy as np
from jax import lax
from jax.experimental import pallas as pl
from jax.experimental.pallas import tpu as pltpu

KH = KW = 3  # kernel_size=3, stride=1, padding=1


def _convgru_kernel(xcols_ref, hcols_ref, hctr_ref,
                    wx_ref, wh_ref, woh_ref, b_ref,
                    out_ref, rh_pad_ref):
    """One batch element per grid step.

    xcols_ref : (1, 9*Cx, HW)  bf16  im2col of x,      K = tap*Cx + cin
    hcols_ref : (1, 9*Ch, HW)  bf16  im2col of h_{t-1}, K = tap*Ch + cin
    hctr_ref  : (1, Ch, HW)    f32   h_{t-1} (kept f32 for the state blend)
    wx_ref    : (3*Ch, 9*Cx)   bf16  x-part conv weights, rows = [r | z | o]
    wh_ref    : (2*Ch, 9*Ch)   bf16  h-part conv weights, rows = [r | z]
    woh_ref   : (9, Ch, Ch)    bf16  o-gate h-part weights, per tap (Cin, Cout)
    b_ref     : (3*Ch, 1)      f32   biases [r | z | o]
    out_ref   : (1, Ch, HW)    f32   h_t  (lane-dense store)
    rh_pad_ref: (H+2, W+2, Ch) f32   scratch: zero-padded r*h for the o-gate conv
    """
    Ch = hctr_ref.shape[1]
    HW = hctr_ref.shape[2]
    Hp, Wp = rh_pad_ref.shape[0], rh_pad_ref.shape[1]
    H, W = Hp - 2, Wp - 2

    # --- fused read/update/output-gate convs: 2 wide MXU matmuls -----------
    xg = jnp.dot(wx_ref[...], xcols_ref[0],
                 preferred_element_type=jnp.float32)        # (3*Ch, HW)
    hg = jnp.dot(wh_ref[...], hcols_ref[0],
                 preferred_element_type=jnp.float32)        # (2*Ch, HW)

    b = b_ref[...]                                          # (3*Ch, 1)
    rz = xg[:2 * Ch] + hg + b[:2 * Ch]                      # (2*Ch, HW)
    read_gate = jax.nn.sigmoid(rz[:Ch])                     # r^t  (Ch, HW)
    update_gate = jax.nn.sigmoid(rz[Ch:])                   # z^t  (Ch, HW)

    h_prev = hctr_ref[0]                                    # (Ch, HW) f32
    rh = read_gate * h_prev                                 # r^t * h_{t-1}

    # --- o-gate conv over r*h: padded scratch + 9 per-tap matmuls ----------
    # Full re-zero each step: the grid axis is megacore-parallel, so a
    # program_id==0 guard would leave the second core's scratch halo dirty.
    rh_pad_ref[...] = jnp.zeros_like(rh_pad_ref)
    rh_pad_ref[1:1 + H, 1:1 + W, :] = jnp.transpose(rh).reshape(H, W, Ch)

    def tap_dot(t):
        dy, dx = t // KW, t % KW
        rh2d = rh_pad_ref[dy:dy + H, dx:dx + W, :].reshape(HW, Ch)
        return jnp.dot(rh2d.astype(jnp.bfloat16), woh_ref[t],
                       preferred_element_type=jnp.float32)  # (HW, Ch)

    oh = tap_dot(0)
    for t in range(1, KH * KW):
        oh = oh + tap_dot(t)

    o_pre = xg[2 * Ch:] + b[2 * Ch:] + jnp.transpose(oh)    # (Ch, HW)
    h_tilde = jnp.maximum(o_pre, 0.0)                       # ReLU

    out_ref[0] = update_gate * h_prev + (1.0 - update_gate) * h_tilde


# ------------------------------ glue ---------------------------------------

def _im2col_kmajor(a):
    """(B, C, H, W) -> (B, 9*C, H*W) with K index = (dy*3+dx)*C + c."""
    B, C, H, W = a.shape
    ap = jnp.pad(a, ((0, 0), (0, 0), (1, 1), (1, 1)))
    taps = [ap[:, :, dy:dy + H, dx:dx + W]
            for dy in range(KH) for dx in range(KW)]        # each (B, C, H, W)
    return jnp.stack(taps, axis=1).reshape(B, KH * KW * C, H * W)


def _fuse_weights(wr, wz, wo, cx):
    """torch-layout (Ch, Cx+Ch, 3, 3) weights -> fused bf16 kernel weights."""
    ch = wr.shape[0]

    def xpart(w):   # (Ch, Cx, 3, 3) -> (Ch, 9*Cx), K = tap*Cx + c
        return jnp.transpose(w[:, :cx], (0, 2, 3, 1)).reshape(ch, KH * KW * cx)

    def hpart(w):   # (Ch, Ch, 3, 3) -> (Ch, 9*Ch), K = tap*Ch + c
        return jnp.transpose(w[:, cx:], (0, 2, 3, 1)).reshape(ch, KH * KW * ch)

    wx_all = jnp.concatenate([xpart(wr), xpart(wz), xpart(wo)], axis=0)  # (3Ch, 9Cx)
    wh_rz = jnp.concatenate([hpart(wr), hpart(wz)], axis=0)              # (2Ch, 9Ch)
    # o-gate h-part, per tap, (Cin, Cout) so rh2d (HW, Cin) @ W -> (HW, Cout)
    wo_h = jnp.transpose(wo[:, cx:], (2, 3, 1, 0)).reshape(KH * KW, ch, ch)
    return (wx_all.astype(jnp.bfloat16), wh_rz.astype(jnp.bfloat16),
            wo_h.astype(jnp.bfloat16))


def convgru_cell_pallas(x, prev_state, wr, br, wz, bz, wo, bo):
    """x: (B, Cx, H, W); prev_state: (B, Ch, H, W); torch-layout weights.
    Returns (out, new_state) in NCHW, matching the PyTorch module."""
    B, Cx, H, W = x.shape
    Ch = prev_state.shape[1]
    HW = H * W
    assert (KH * KW * Cx) % 8 == 0 and Ch % 8 == 0 and HW % 128 == 0

    x_cols = _im2col_kmajor(x).astype(jnp.bfloat16)            # (B, 9Cx, HW)
    h_cols = _im2col_kmajor(prev_state).astype(jnp.bfloat16)   # (B, 9Ch, HW)
    h_ctr = prev_state.reshape(B, Ch, HW).astype(jnp.float32)  # (B, Ch, HW)

    wx_all, wh_rz, wo_h = _fuse_weights(wr, wz, wo, Cx)
    b_all = jnp.concatenate([br, bz, bo]).reshape(3 * Ch, 1).astype(jnp.float32)

    out_chw = pl.pallas_call(
        _convgru_kernel,
        out_shape=jax.ShapeDtypeStruct((B, Ch, HW), jnp.float32),
        grid_spec=pltpu.PrefetchScalarGridSpec(
            num_scalar_prefetch=0,
            grid=(B,),
            in_specs=[
                pl.BlockSpec((1, KH * KW * Cx, HW), lambda b: (b, 0, 0)),
                pl.BlockSpec((1, KH * KW * Ch, HW), lambda b: (b, 0, 0)),
                pl.BlockSpec((1, Ch, HW), lambda b: (b, 0, 0)),
                pl.BlockSpec((3 * Ch, KH * KW * Cx), lambda b: (0, 0)),
                pl.BlockSpec((2 * Ch, KH * KW * Ch), lambda b: (0, 0)),
                pl.BlockSpec((KH * KW, Ch, Ch), lambda b: (0, 0, 0)),
                pl.BlockSpec((3 * Ch, 1), lambda b: (0, 0)),
            ],
            out_specs=pl.BlockSpec((1, Ch, HW), lambda b: (b, 0, 0)),
            scratch_shapes=[pltpu.VMEM((H + 2, W + 2, Ch), jnp.float32)],
        ),
        compiler_params=pltpu.CompilerParams(
            dimension_semantics=("parallel",)),
    )(x_cols, h_cols, h_ctr, wx_all, wh_rz, wo_h, b_all)

    out = out_chw.reshape(B, Ch, H, W)   # lane-dense output: reshape only
    return out, out


# ------------------------- parameter setup (glue) --------------------------

def _init_conv_params(key, cin, cout, k=3):
    """Deterministic Conv2d-style init (kaiming-uniform-like bounds)."""
    wkey, bkey = jax.random.split(key)
    fan_in = cin * k * k
    bound = 1.0 / np.sqrt(fan_in)
    w = jax.random.uniform(wkey, (cout, cin, k, k), jnp.float32, -bound, bound)
    b = jax.random.uniform(bkey, (cout,), jnp.float32, -bound, bound)
    return w, b


def _spectral_normalize(w):
    """W / sigma_max(W.reshape(Cout, -1)) — the spectral_norm fixed point."""
    w_mat = w.reshape(w.shape[0], -1)
    sigma = jnp.linalg.svd(w_mat, compute_uv=False)[0]
    return w / sigma


# ------------------------- pure-JAX reference ------------------------------

def _ref_conv(x_nchw, w_oihw, b):
    y = lax.conv_general_dilated(x_nchw, w_oihw, window_strides=(1, 1),
                                 padding=((1, 1), (1, 1)),
                                 dimension_numbers=('NCHW', 'OIHW', 'NCHW'))
    return y + b[None, :, None, None]


def convgru_ref(x, h, wr, br, wz, bz, wo, bo):
    xh = jnp.concatenate([x, h], axis=1)
    r = jax.nn.sigmoid(_ref_conv(xh, wr, br))
    z = jax.nn.sigmoid(_ref_conv(xh, wz, bz))
    gated = jnp.concatenate([x, r * h], axis=1)
    h_tilde = jax.nn.relu(_ref_conv(gated, wo, bo))
    out = z * h + (1.0 - z) * h_tilde
    return out, out


if __name__ == "__main__":
    B, Cx, Ch, H, W = 2, 8, 32, 16, 16
    input_channels = Cx + Ch      # module concatenates x and prev_state
    output_channels = Ch

    key = jax.random.PRNGKey(0)
    kx, kh, k1, k2, k3 = jax.random.split(key, 5)
    x = jax.random.normal(kx, (B, Cx, H, W), jnp.float32)
    prev_state = jax.random.normal(kh, (B, Ch, H, W), jnp.float32)

    wr, br = _init_conv_params(k1, input_channels, output_channels)
    wz, bz = _init_conv_params(k2, input_channels, output_channels)
    wo, bo = _init_conv_params(k3, input_channels, output_channels)
    wr, wz, wo = (_spectral_normalize(wr), _spectral_normalize(wz),
                  _spectral_normalize(wo))

    out, new_state = convgru_cell_pallas(x, prev_state, wr, br, wz, bz, wo, bo)
    out = jax.block_until_ready(out)

    # Reference is pure f32; the kernel uses bf16 MXU operands with f32
    # accumulation, so allow a slightly wider (but still tight) tolerance.
    ref_out, _ = convgru_ref(x, prev_state, wr, br, wz, bz, wo, bo)
    np.testing.assert_allclose(np.asarray(out), np.asarray(ref_out),
                               rtol=2e-2, atol=2e-2)
    print("KERNEL_OK")
</pallas_src>

<mosaic_0001>
module attributes {stable_mosaic.version = 11 : i64} {
  func.func @_convgru_kernel(%arg0: i32, %arg1: memref<1x72x256xbf16, #tpu.memory_space<vmem>>, %arg2: memref<1x288x256xbf16, #tpu.memory_space<vmem>>, %arg3: memref<1x32x256xf32, #tpu.memory_space<vmem>>, %arg4: memref<96x72xbf16, #tpu.memory_space<vmem>>, %arg5: memref<64x288xbf16, #tpu.memory_space<vmem>>, %arg6: memref<9x32x32xbf16, #tpu.memory_space<vmem>>, %arg7: memref<96x1xf32, #tpu.memory_space<vmem>>, %arg8: memref<1x32x256xf32, #tpu.memory_space<vmem>>, %arg9: memref<18x18x32xf32, #tpu.memory_space<vmem>>) attributes {dimension_semantics = [#tpu.dimension_semantics<parallel>], iteration_bounds = array<i64: 2>, scalar_prefetch = 0 : i64, scratch_operands = 1 : i64, tpu.core_type = #tpu.core_type<tc>, window_params = [{transform_indices = @transform_0, window_bounds = array<i64: 1, 72, 256>}, {transform_indices = @transform_1, window_bounds = array<i64: 1, 288, 256>}, {transform_indices = @transform_2, window_bounds = array<i64: 1, 32, 256>}, {pipeline_mode = #tpu.pipeline_mode<synchronous>, transform_indices = @transform_3, window_bounds = array<i64: 96, 72>}, {pipeline_mode = #tpu.pipeline_mode<synchronous>, transform_indices = @transform_4, window_bounds = array<i64: 64, 288>}, {pipeline_mode = #tpu.pipeline_mode<synchronous>, transform_indices = @transform_5, window_bounds = array<i64: 9, 32, 32>}, {pipeline_mode = #tpu.pipeline_mode<synchronous>, transform_indices = @transform_6, window_bounds = array<i64: 96, 1>}, {transform_indices = @transform_7, window_bounds = array<i64: 1, 32, 256>}]} {
    %c0 = arith.constant 0 : index
    %c0_0 = arith.constant 0 : index
    %0 = vector.load %arg4[%c0, %c0_0] : memref<96x72xbf16, #tpu.memory_space<vmem>>, vector<96x72xbf16>
    %c0_1 = arith.constant 0 : index
    %c0_2 = arith.constant 0 : index
    %c0_3 = arith.constant 0 : index
    %1 = vector.load %arg1[%c0_1, %c0_2, %c0_3] : memref<1x72x256xbf16, #tpu.memory_space<vmem>>, vector<1x72x256xbf16>
    %2 = vector.shape_cast %1 : vector<1x72x256xbf16> to vector<72x256xbf16>
    %cst = arith.constant dense<0.000000e+00> : vector<96x256xf32>
    %3 = tpu.matmul %0, %2, %cst {dimension_numbers = #tpu.dot_dimension_numbers<[1], [0], [0], [1], [0, 0, 1, 1], [], []>} : vector<96x72xbf16>, vector<72x256xbf16>, vector<96x256xf32> -> vector<96x256xf32>
    %c0_4 = arith.constant 0 : index
    %c0_5 = arith.constant 0 : index
    %4 = vector.load %arg5[%c0_4, %c0_5] : memref<64x288xbf16, #tpu.memory_space<vmem>>, vector<64x288xbf16>
    %c0_6 = arith.constant 0 : index
    %c0_7 = arith.constant 0 : index
    %c0_8 = arith.constant 0 : index
    %5 = vector.load %arg2[%c0_6, %c0_7, %c0_8] : memref<1x288x256xbf16, #tpu.memory_space<vmem>>, vector<1x288x256xbf16>
    %6 = vector.shape_cast %5 : vector<1x288x256xbf16> to vector<288x256xbf16>
    %cst_9 = arith.constant dense<0.000000e+00> : vector<64x256xf32>
    %7 = tpu.matmul %4, %6, %cst_9 {dimension_numbers = #tpu.dot_dimension_numbers<[1], [0], [0], [1], [0, 0, 1, 1], [], []>} : vector<64x288xbf16>, vector<288x256xbf16>, vector<64x256xf32> -> vector<64x256xf32>
    %c0_10 = arith.constant 0 : index
    %c0_11 = arith.constant 0 : index
    %8 = vector.load %arg7[%c0_10, %c0_11] : memref<96x1xf32, #tpu.memory_space<vmem>>, vector<96x1xf32>
    %9 = vector.extract_strided_slice %3 {offsets = [0, 0], sizes = [64, 256], strides = [1, 1]} : vector<96x256xf32> to vector<64x256xf32>
    %10 = arith.addf %9, %7 : vector<64x256xf32>
    %11 = vector.extract_strided_slice %8 {offsets = [0, 0], sizes = [64, 1], strides = [1, 1]} : vector<96x1xf32> to vector<64x1xf32>
    %12 = vector.broadcast %11 : vector<64x1xf32> to vector<64x256xf32>
    %13 = arith.addf %10, %12 : vector<64x256xf32>
    %14 = vector.extract_strided_slice %13 {offsets = [0, 0], sizes = [32, 256], strides = [1, 1]} : vector<64x256xf32> to vector<32x256xf32>
    %15 = arith.negf %14 : vector<32x256xf32>
    %16 = math.exp %15 : vector<32x256xf32>
    %cst_12 = arith.constant 1.000000e+00 : f32
    %17 = vector.broadcast %cst_12 : f32 to vector<32x256xf32>
    %18 = arith.addf %17, %16 : vector<32x256xf32>
    %19 = arith.divf %17, %18 : vector<32x256xf32>
    %20 = vector.extract_strided_slice %13 {offsets = [32, 0], sizes = [32, 256], strides = [1, 1]} : vector<64x256xf32> to vector<32x256xf32>
    %21 = arith.negf %20 : vector<32x256xf32>
    %22 = math.exp %21 : vector<32x256xf32>
    %cst_13 = arith.constant 1.000000e+00 : f32
    %23 = vector.broadcast %cst_13 : f32 to vector<32x256xf32>
    %24 = arith.addf %23, %22 : vector<32x256xf32>
    %25 = arith.divf %23, %24 : vector<32x256xf32>
    %c0_14 = arith.constant 0 : index
    %c0_15 = arith.constant 0 : index
    %c0_16 = arith.constant 0 : index
    %26 = vector.load %arg3[%c0_14, %c0_15, %c0_16] : memref<1x32x256xf32, #tpu.memory_space<vmem>>, vector<1x32x256xf32>
    %27 = vector.shape_cast %26 : vector<1x32x256xf32> to vector<32x256xf32>
    %28 = arith.mulf %19, %27 : vector<32x256xf32>
    %cst_17 = arith.constant 0.000000e+00 : f32
    %29 = vector.broadcast %cst_17 : f32 to vector<18x18x32xf32>
    %c0_18 = arith.constant 0 : index
    %c0_19 = arith.constant 0 : index
    %c0_20 = arith.constant 0 : index
    %30 = vector.load %arg9[%c0_18, %c0_19, %c0_20] : memref<18x18x32xf32, #tpu.memory_space<vmem>>, vector<18x18x32xf32>
    tpu.vector_store %arg9[%c0_18, %c0_19, %c0_20], %29 {strides = array<i32>} : memref<18x18x32xf32, #tpu.memory_space<vmem>>, vector<18x18x32xf32>,
    %31 = tpu.transpose %28, [1, 0] : vector<32x256xf32> -> vector<256x32xf32>
    %32 = vector.shape_cast %31 : vector<256x32xf32> to vector<16x16x32xf32>
    %c1 = arith.constant 1 : index
    %c1_21 = arith.constant 1 : index
    %c0_22 = arith.constant 0 : index
    %33 = vector.load %arg9[%c1, %c1_21, %c0_22] : memref<18x18x32xf32, #tpu.memory_space<vmem>>, vector<16x16x32xf32>
    tpu.vector_store %arg9[%c1, %c1_21, %c0_22], %32 {strides = array<i32>} : memref<18x18x32xf32, #tpu.memory_space<vmem>>, vector<16x16x32xf32>,
    %c0_23 = arith.constant 0 : index
    %c0_24 = arith.constant 0 : index
    %c0_25 = arith.constant 0 : index
    %34 = vector.load %arg9[%c0_23, %c0_24, %c0_25] : memref<18x18x32xf32, #tpu.memory_space<vmem>>, vector<16x16x32xf32>
    %35 = vector.shape_cast %34 : vector<16x16x32xf32> to vector<256x32xf32>
    %36 = arith.truncf %35 : vector<256x32xf32> to vector<256x32xbf16>
    %c0_26 = arith.constant 0 : index
    %c0_27 = arith.constant 0 : index
    %c0_28 = arith.constant 0 : index
    %37 = vector.load %arg6[%c0_26, %c0_27, %c0_28] : memref<9x32x32xbf16, #tpu.memory_space<vmem>>, vector<1x32x32xbf16>
    %38 = vector.shape_cast %37 : vector<1x32x32xbf16> to vector<32x32xbf16>
    %cst_29 = arith.constant dense<0.000000e+00> : vector<256x32xf32>
    %39 = tpu.matmul %36, %38, %cst_29 {dimension_numbers = #tpu.dot_dimension_numbers<[1], [0], [0], [1], [0, 0, 1, 1], [], []>} : vector<256x32xbf16>, vector<32x32xbf16>, vector<256x32xf32> -> vector<256x32xf32>
    %c0_30 = arith.constant 0 : index
    %c1_31 = arith.constant 1 : index
    %c0_32 = arith.constant 0 : index
    %40 = vector.load %arg9[%c0_30, %c1_31, %c0_32] : memref<18x18x32xf32, #tpu.memory_space<vmem>>, vector<16x16x32xf32>
    %41 = vector.shape_cast %40 : vector<16x16x32xf32> to vector<256x32xf32>
    %42 = arith.truncf %41 : vector<256x32xf32> to vector<256x32xbf16>
    %c1_33 = arith.constant 1 : index
    %c0_34 = arith.constant 0 : index
    %c0_35 = arith.constant 0 : index
    %43 = vector.load %arg6[%c1_33, %c0_34, %c0_35] : memref<9x32x32xbf16, #tpu.memory_space<vmem>>, vector<1x32x32xbf16>
    %44 = vector.shape_cast %43 : vector<1x32x32xbf16> to vector<32x32xbf16>
    %cst_36 = arith.constant dense<0.000000e+00> : vector<256x32xf32>
    %45 = tpu.matmul %42, %44, %cst_36 {dimension_numbers = #tpu.dot_dimension_numbers<[1], [0], [0], [1], [0, 0, 1, 1], [], []>} : vector<256x32xbf16>, vector<32x32xbf16>, vector<256x32xf32> -> vector<256x32xf32>
    %46 = arith.addf %39, %45 : vector<256x32xf32>
    %c0_37 = arith.constant 0 : index
    %c2 = arith.constant 2 : index
    %c0_38 = arith.constant 0 : index
    %47 = vector.load %arg9[%c0_37, %c2, %c0_38] : memref<18x18x32xf32, #tpu.memory_space<vmem>>, vector<16x16x32xf32>
    %48 = vector.shape_cast %47 : vector<16x16x32xf32> to vector<256x32xf32>
    %49 = arith.truncf %48 : vector<256x32xf32> to vector<256x32xbf16>
    %c2_39 = arith.constant 2 : index
    %c0_40 = arith.constant 0 : index
    %c0_41 = arith.constant 0 : index
    %50 = vector.load %arg6[%c2_39, %c0_40, %c0_41] : memref<9x32x32xbf16, #tpu.memory_space<vmem>>, vector<1x32x32xbf16>
    %51 = vector.shape_cast %50 : vector<1x32x32xbf16> to vector<32x32xbf16>
    %cst_42 = arith.constant dense<0.000000e+00> : vector<256x32xf32>
    %52 = tpu.matmul %49, %51, %cst_42 {dimension_numbers = #tpu.dot_dimension_numbers<[1], [0], [0], [1], [0, 0, 1, 1], [], []>} : vector<256x32xbf16>, vector<32x32xbf16>, vector<256x32xf32> -> vector<256x32xf32>
    %53 = arith.addf %46, %52 : vector<256x32xf32>
    %c1_43 = arith.constant 1 : index
    %c0_44 = arith.constant 0 : index
    %c0_45 = arith.constant 0 : index
    %54 = vector.load %arg9[%c1_43, %c0_44, %c0_45] : memref<18x18x32xf32, #tpu.memory_space<vmem>>, vector<16x16x32xf32>
    %55 = vector.shape_cast %54 : vector<16x16x32xf32> to vector<256x32xf32>
    %56 = arith.truncf %55 : vector<256x32xf32> to vector<256x32xbf16>
    %c3 = arith.constant 3 : index
    %c0_46 = arith.constant 0 : index
    %c0_47 = arith.constant 0 : index
    %57 = vector.load %arg6[%c3, %c0_46, %c0_47] : memref<9x32x32xbf16, #tpu.memory_space<vmem>>, vector<1x32x32xbf16>
    %58 = vector.shape_cast %57 : vector<1x32x32xbf16> to vector<32x32xbf16>
    %cst_48 = arith.constant dense<0.000000e+00> : vector<256x32xf32>
    %59 = tpu.matmul %56, %58, %cst_48 {dimension_numbers = #tpu.dot_dimension_numbers<[1], [0], [0], [1], [0, 0, 1, 1], [], []>} : vector<256x32xbf16>, vector<32x32xbf16>, vector<256x32xf32> -> vector<256x32xf32>
    %60 = arith.addf %53, %59 : vector<256x32xf32>
    %c1_49 = arith.constant 1 : index
    %c1_50 = arith.constant 1 : index
    %c0_51 = arith.constant 0 : index
    %61 = vector.load %arg9[%c1_49, %c1_50, %c0_51] : memref<18x18x32xf32, #tpu.memory_space<vmem>>, vector<16x16x32xf32>
    %62 = vector.shape_cast %61 : vector<16x16x32xf32> to vector<256x32xf32>
    %63 = arith.truncf %62 : vector<256x32xf32> to vector<256x32xbf16>
    %c4 = arith.constant 4 : index
    %c0_52 = arith.constant 0 : index
    %c0_53 = arith.constant 0 : index
    %64 = vector.load %arg6[%c4, %c0_52, %c0_53] : memref<9x32x32xbf16, #tpu.memory_space<vmem>>, vector<1x32x32xbf16>
    %65 = vector.shape_cast %64 : vector<1x32x32xbf16> to vector<32x32xbf16>
    %cst_54 = arith.constant dense<0.000000e+00> : vector<256x32xf32>
    %66 = tpu.matmul %63, %65, %cst_54 {dimension_numbers = #tpu.dot_dimension_numbers<[1], [0], [0], [1], [0, 0, 1, 1], [], []>} : vector<256x32xbf16>, vector<32x32xbf16>, vector<256x32xf32> -> vector<256x32xf32>
    %67 = arith.addf %60, %66 : vector<256x32xf32>
    %c1_55 = arith.constant 1 : index
    %c2_56 = arith.constant 2 : index
    %c0_57 = arith.constant 0 : index
    %68 = vector.load %arg9[%c1_55, %c2_56, %c0_57] : memref<18x18x32xf32, #tpu.memory_space<vmem>>, vector<16x16x32xf32>
    %69 = vector.shape_cast %68 : vector<16x16x32xf32> to vector<256x32xf32>
    %70 = arith.truncf %69 : vector<256x32xf32> to vector<256x32xbf16>
    %c5 = arith.constant 5 : index
    %c0_58 = arith.constant 0 : index
    %c0_59 = arith.constant 0 : index
    %71 = vector.load %arg6[%c5, %c0_58, %c0_59] : memref<9x32x32xbf16, #tpu.memory_space<vmem>>, vector<1x32x32xbf16>
    %72 = vector.shape_cast %71 : vector<1x32x32xbf16> to vector<32x32xbf16>
    %cst_60 = arith.constant dense<0.000000e+00> : vector<256x32xf32>
    %73 = tpu.matmul %70, %72, %cst_60 {dimension_numbers = #tpu.dot_dimension_numbers<[1], [0], [0], [1], [0, 0, 1, 1], [], []>} : vector<256x32xbf16>, vector<32x32xbf16>, vector<256x32xf32> -> vector<256x32xf32>
    %74 = arith.addf %67, %73 : vector<256x32xf32>
    %c2_61 = arith.constant 2 : index
    %c0_62 = arith.constant 0 : index
    %c0_63 = arith.constant 0 : index
    %75 = vector.load %arg9[%c2_61, %c0_62, %c0_63] : memref<18x18x32xf32, #tpu.memory_space<vmem>>, vector<16x16x32xf32>
    %76 = vector.shape_cast %75 : vector<16x16x32xf32> to vector<256x32xf32>
    %77 = arith.truncf %76 : vector<256x32xf32> to vector<256x32xbf16>
    %c6 = arith.constant 6 : index
    %c0_64 = arith.constant 0 : index
    %c0_65 = arith.constant 0 : index
    %78 = vector.load %arg6[%c6, %c0_64, %c0_65] : memref<9x32x32xbf16, #tpu.memory_space<vmem>>, vector<1x32x32xbf16>
    %79 = vector.shape_cast %78 : vector<1x32x32xbf16> to vector<32x32xbf16>
    %cst_66 = arith.constant dense<0.000000e+00> : vector<256x32xf32>
    %80 = tpu.matmul %77, %79, %cst_66 {dimension_numbers = #tpu.dot_dimension_numbers<[1], [0], [0], [1], [0, 0, 1, 1], [], []>} : vector<256x32xbf16>, vector<32x32xbf16>, vector<256x32xf32> -> vector<256x32xf32>
    %81 = arith.addf %74, %80 : vector<256x32xf32>
    %c2_67 = arith.constant 2 : index
    %c1_68 = arith.constant 1 : index
    %c0_69 = arith.constant 0 : index
    %82 = vector.load %arg9[%c2_67, %c1_68, %c0_69] : memref<18x18x32xf32, #tpu.memory_space<vmem>>, vector<16x16x32xf32>
    %83 = vector.shape_cast %82 : vector<16x16x32xf32> to vector<256x32xf32>
    %84 = arith.truncf %83 : vector<256x32xf32> to vector<256x32xbf16>
    %c7 = arith.constant 7 : index
    %c0_70 = arith.constant 0 : index
    %c0_71 = arith.constant 0 : index
    %85 = vector.load %arg6[%c7, %c0_70, %c0_71] : memref<9x32x32xbf16, #tpu.memory_space<vmem>>, vector<1x32x32xbf16>
    %86 = vector.shape_cast %85 : vector<1x32x32xbf16> to vector<32x32xbf16>
    %cst_72 = arith.constant dense<0.000000e+00> : vector<256x32xf32>
    %87 = tpu.matmul %84, %86, %cst_72 {dimension_numbers = #tpu.dot_dimension_numbers<[1], [0], [0], [1], [0, 0, 1, 1], [], []>} : vector<256x32xbf16>, vector<32x32xbf16>, vector<256x32xf32> -> vector<256x32xf32>
    %88 = arith.addf %81, %87 : vector<256x32xf32>
    %c2_73 = arith.constant 2 : index
    %c2_74 = arith.constant 2 : index
    %c0_75 = arith.constant 0 : index
    %89 = vector.load %arg9[%c2_73, %c2_74, %c0_75] : memref<18x18x32xf32, #tpu.memory_space<vmem>>, vector<16x16x32xf32>
    %90 = vector.shape_cast %89 : vector<16x16x32xf32> to vector<256x32xf32>
    %91 = arith.truncf %90 : vector<256x32xf32> to vector<256x32xbf16>
    %c8 = arith.constant 8 : index
    %c0_76 = arith.constant 0 : index
    %c0_77 = arith.constant 0 : index
    %92 = vector.load %arg6[%c8, %c0_76, %c0_77] : memref<9x32x32xbf16, #tpu.memory_space<vmem>>, vector<1x32x32xbf16>
    %93 = vector.shape_cast %92 : vector<1x32x32xbf16> to vector<32x32xbf16>
    %cst_78 = arith.constant dense<0.000000e+00> : vector<256x32xf32>
    %94 = tpu.matmul %91, %93, %cst_78 {dimension_numbers = #tpu.dot_dimension_numbers<[1], [0], [0], [1], [0, 0, 1, 1], [], []>} : vector<256x32xbf16>, vector<32x32xbf16>, vector<256x32xf32> -> vector<256x32xf32>
    %95 = arith.addf %88, %94 : vector<256x32xf32>
    %96 = vector.extract_strided_slice %3 {offsets = [64, 0], sizes = [32, 256], strides = [1, 1]} : vector<96x256xf32> to vector<32x256xf32>
    %97 = vector.extract_strided_slice %8 {offsets = [64, 0], sizes = [32, 1], strides = [1, 1]} : vector<96x1xf32> to vector<32x1xf32>
    %98 = vector.broadcast %97 : vector<32x1xf32> to vector<32x256xf32>
    %99 = arith.addf %96, %98 : vector<32x256xf32>
    %100 = tpu.transpose %95, [1, 0] : vector<256x32xf32> -> vector<32x256xf32>
    %101 = arith.addf %99, %100 : vector<32x256xf32>
    %cst_79 = arith.constant 0.000000e+00 : f32
    %102 = vector.broadcast %cst_79 : f32 to vector<32x256xf32>
    %103 = arith.maximumf %101, %102 : vector<32x256xf32>
    %104 = arith.mulf %25, %27 : vector<32x256xf32>
    %cst_80 = arith.constant 1.000000e+00 : f32
    %105 = vector.broadcast %cst_80 : f32 to vector<32x256xf32>
    %106 = arith.subf %105, %25 : vector<32x256xf32>
    %107 = arith.mulf %106, %103 : vector<32x256xf32>
    %108 = arith.addf %104, %107 : vector<32x256xf32>
    %c0_81 = arith.constant 0 : index
    %c0_82 = arith.constant 0 : index
    %c0_83 = arith.constant 0 : index
    %109 = vector.load %arg8[%c0_81, %c0_82, %c0_83] : memref<1x32x256xf32, #tpu.memory_space<vmem>>, vector<1x32x256xf32>
    %110 = vector.shape_cast %109 : vector<1x32x256xf32> to vector<32x256xf32>
    %111 = vector.shape_cast %108 : vector<32x256xf32> to vector<1x32x256xf32>
    tpu.vector_store %arg8[%c0_81, %c0_82, %c0_83], %111 {strides = array<i32>} : memref<1x32x256xf32, #tpu.memory_space<vmem>>, vector<1x32x256xf32>,
    return
  }
  func.func @transform_0(%arg0: i32) -> (i32, i32, i32) {
    %c0_i32 = arith.constant 0 : i32
    %c0_i32_0 = arith.constant 0 : i32
    %c0_i32_1 = arith.constant 0 : i32
    return %arg0, %c0_i32, %c0_i32_0 : i32, i32, i32
  }
  func.func @transform_1(%arg0: i32) -> (i32, i32, i32) {
    %c0_i32 = arith.constant 0 : i32
    %c0_i32_0 = arith.constant 0 : i32
    %c0_i32_1 = arith.constant 0 : i32
    return %arg0, %c0_i32, %c0_i32_0 : i32, i32, i32
  }
  func.func @transform_2(%arg0: i32) -> (i32, i32, i32) {
    %c0_i32 = arith.constant 0 : i32
    %c0_i32_0 = arith.constant 0 : i32
    %c0_i32_1 = arith.constant 0 : i32
    return %arg0, %c0_i32, %c0_i32_0 : i32, i32, i32
  }
  func.func @transform_3(%arg0: i32) -> (i32, i32) {
    %c0_i32 = arith.constant 0 : i32
    %c0_i32_0 = arith.constant 0 : i32
    %c0_i32_1 = arith.constant 0 : i32
    return %c0_i32, %c0_i32_0 : i32, i32
  }
  func.func @transform_4(%arg0: i32) -> (i32, i32) {
    %c0_i32 = arith.constant 0 : i32
    %c0_i32_0 = arith.constant 0 : i32
    %c0_i32_1 = arith.constant 0 : i32
    return %c0_i32, %c0_i32_0 : i32, i32
  }
  func.func @transform_5(%arg0: i32) -> (i32, i32, i32) {
    %c0_i32 = arith.constant 0 : i32
    %c0_i32_0 = arith.constant 0 : i32
    %c0_i32_1 = arith.constant 0 : i32
    %c0_i32_2 = arith.constant 0 : i32
    return %c0_i32, %c0_i32_0, %c0_i32_1 : i32, i32, i32
  }
  func.func @transform_6(%arg0: i32) -> (i32, i32) {
    %c0_i32 = arith.constant 0 : i32
    %c0_i32_0 = arith.constant 0 : i32
    %c0_i32_1 = arith.constant 0 : i32
    return %c0_i32, %c0_i32_0 : i32, i32
  }
  func.func @transform_7(%arg0: i32) -> (i32, i32, i32) {
    %c0_i32 = arith.constant 0 : i32
    %c0_i32_0 = arith.constant 0 : i32
    %c0_i32_1 = arith.constant 0 : i32
    return %arg0, %c0_i32, %c0_i32_0 : i32, i32, i32
  }
}

</mosaic_0001>

<bundles_post_ra>
// kernel: tpu_custom_call.1
= control target key start
LH: loop header
LB: loop body
LE: loop exit
PB: predicated region body
PF: predicated region fallthrough
CT: control target
= control target key end

     0   :  { %s7046_s0 = inlined_call_operand.vmem [shape: bf16[2,72,256], index: 0, kind: input, shape index: {}]   ;;  %s7047_s1 = inlined_call_operand.hbm [shape: bf16[2,288,256], index: 1, kind: input, shape index: {}]   ;;  %s7048_s2 = inlined_call_operand.hbm [shape: f32[2,32,256], index: 2, kind: input, shape index: {}]   ;;  %s7049_s3 = inlined_call_operand.vmem [shape: bf16[96,72], index: 3, kind: input, shape index: {}]   ;;  %s7050_s4 = inlined_call_operand.hbm [shape: bf16[64,288], index: 4, kind: input, shape index: {}]   ;;  %s7051_s5 = inlined_call_operand.hbm [shape: bf16[9,32,32], index: 5, kind: input, shape index: {}]   ;;  %s7052_s6 = inlined_call_operand.vmem [shape: f32[96,1], index: 6, kind: input, shape index: {}]   ;;  %s7053_s7 = inlined_call_operand.hbm [shape: f32[2,32,256], index: 7, kind: output, shape index: {}]  }
   0x1   :  { %7058 = sst [smem:[#allocation20_spill]] %s7047_s1 }
   0x2   :  { %7059 = sst [smem:[#allocation21_spill]] %s7050_s4 }
   0x3   :  { %7060 = sst [smem:[#allocation22_spill]] %s7051_s5 }
   0x4   :  { %12 = vsyncpa [#allocation4], 0 }
   0x5   :  { %14 = vsyncpa [#allocation4 + $0x1], 0 }
   0x6   :  { %15 = vsyncpa [#allocation7], 0 }
   0x7   :  { %17 = vsyncpa [#allocation7 + $0x1], 0 }
   0x8   :  { %18 = vsyncpa [#allocation10], 0 }
   0x9   :  { %19 = vsyncpa [#allocation5], 0 }
   0xa   :  { %21 = vsyncpa [#allocation5 + $0x1], 0  ;;  %s5956_s24 = smov 0   ;;  %s5958_s25 = smov 0  }
   0xb   :  { %s5960_s26 = smov 0   ;;  %s5962_s27 = smov 0  }
   0xc LB: > { %7061 = sst [smem:[#allocation17_spill]] %s5893_s26  ;;  %s5977_s28 = sadd.s32 4294967295, %s5897_s27   ;;  %s5897_s27 = sphi %s5962_s27, %s7088_s27   ;;  %s5893_s26 = sphi %s5960_s26, %s7085_s26   ;;  %s5889_s25 = sphi %s5958_s25, %s7087_s25   ;;  %s5885_s24 = sphi %s5956_s24, %s7086_s24  }
   0xd   : > { %s4380_s29 = sadd.s32 4294967294, %s5897_s27   ;;  %p73_p0 = scmp.ne.s32.totalorder %s5889_s25, %s5885_s24 }
   0xe   : > { %p7054_p1 = scmp.eq.s32.totalorder %s5977_s28, 0  ;;  %p213_p3 = scmp.eq.s32.totalorder %s4380_s29, 1 }
   0xf   : > { %p4381_p5 = scmp.ge.s32.totalorder %s5897_s27, 1  ;;  %p220_p7 = scmp.lt.s32.totalorder %s5897_s27, 3 }
  0x10   : > { %p5986_p4 = por %p7054_p1, %p73_p0  ;;  %p5991_p6 = por %p213_p3, %p73_p0 }
  0x11   : > { %p5996_p8 = pnand %p4381_p5, %p220_p7  ;;  %s5899_s10 = smov [#allocation8]  }
  0x12   : > { %s7062_s30 = scalar_select %p5986_p4, 1, 0 }
  0x13   : > { %s7063_s8 = scalar_select %p5991_p6, 1, 0 }
  0x14   : > { %s235_s11 = sshll.u32 %s5899_s10, 4  ;;  %p5451_p9 = pneg %p5996_p8  ;;  %s6000_s11 = int_to_ptr.vmem [resolvable:$true] %s235_s11 }
  0x15   : > { %s5900_s13 = smov [#allocation9]   ;;  %s7066_s4 = sld [smem:[#allocation21_spill]] }
  0x16   : > { %p6007_p11 = pnand %p5451_p9, %p7054_p1  ;;  %s248_s14 = sshll.u32 %s5900_s13, 4  ;;  %s6011_s14 = int_to_ptr.vmem [resolvable:$true] %s248_s14 }
  0x18   : > { %p5705_p13 = pneg %p6007_p11 }
  0x1b   : > { %s5703_s17 = scalar_lea.hbm %s7066_s4, 1536 }
  0x1c   : > { %p5704_p12 = scmp.ne.s32.totalorder %s7066_s4, %s5703_s17  ;;  %p5710_p5 = scmp.lt.u32.totalorder %s5703_s17, %s7066_s4 }
  0x1e   : > { %p5706_p0 = pnand %p5705_p13, %p5704_p12 }
  0x20   : > { %p5707_p3 = pneg %p5706_p0 }
  0x22   : > { %p5712_p7 = pnand %p5710_p5, %p5707_p3 }
  0x24   : > { %5715 = shalt.err (!%p5712_p7)
}
  0x25   : > { %s5716_s22 = scalar_lea.vmem %s6000_s11, 1536  ;;  %p5724_p2 = scmp.lt.s32.totalorder %s6000_s11, %s6000_s11 }
  0x26   : > { %p5717_p9 = scmp.ne.s32.totalorder %s6000_s11, %s5716_s22  ;;  %p5725_p12 = scmp.lt.s32.totalorder %s5716_s22, %s5716_s22 }
  0x28   : > { %p5719_p10 = pnand %p5717_p9, %p5705_p13  ;;  %p5726_p0 = por %p5725_p12, %p5724_p2 }
  0x2a   : > { %p5720_p1 = pneg %p5719_p10 }
  0x2c   : > { %p5727_p6 = pnand %p5726_p0, %p5720_p1 }
  0x2e   : > { %5730 = shalt.err (!%p5727_p6)
}
  0x2f   : > { %s5901_s23 = smov 192   ;;  %s5902_s29 = smov 12  }
  0x30   : > { %5454 = dma.hbm_to_vmem [thread:$0]  (!%p6007_p11), %s7066_s4, 1536, %s6000_s11, [#allocation7], %s5901_s23, %s5901_s23, %s5902_s29  }
  0x31   : > { %s7067_s5 = sld [smem:[#allocation22_spill]] }
  0x37   : > { %s5731_s17 = scalar_lea.hbm %s7067_s5, 2304 }
  0x38   : > { %p5732_p2 = scmp.ne.s32.totalorder %s7067_s5, %s5731_s17  ;;  %p5738_p10 = scmp.lt.u32.totalorder %s5731_s17, %s7067_s5 }
  0x3a   : > { %p5734_p1 = pnand %p5732_p2, %p5705_p13 }
  0x3c   : > { %p5735_p6 = pneg %p5734_p1 }
  0x3e   : > { %p5740_p3 = pnand %p5738_p10, %p5735_p6 }
  0x40   : > { %5743 = shalt.err (!%p5740_p3)
}
  0x41   : > { %s5744_s11 = scalar_lea.vmem %s6011_s14, 2304  ;;  %p5752_p12 = scmp.lt.s32.totalorder %s6011_s14, %s6011_s14 }
  0x42   : > { %p5745_p5 = scmp.ne.s32.totalorder %s6011_s14, %s5744_s11  ;;  %p5753_p0 = scmp.lt.s32.totalorder %s5744_s11, %s5744_s11 }
  0x44   : > { %p5747_p7 = pnand %p5745_p5, %p5705_p13  ;;  %p5754_p2 = por %p5753_p0, %p5752_p12 }
  0x46   : > { %p5748_p9 = pneg %p5747_p7 }
  0x48   : > { %p5755_p1 = pnand %p5754_p2, %p5748_p9 }
  0x4a   : > { %5758 = shalt.err (!%p5755_p1)
}
  0x4b   : > { %s5903_s22 = smov 64   ;;  %s5904_s23 = smov 4  }
  0x4c   : > { %5457 = dma.hbm_to_vmem [thread:$0]  (!%p6007_p11), %s7067_s5, 2304, %s6011_s14, [#allocation10], %s5903_s22, %s5903_s22, %s5904_s23  }
  0x4d   : > { %s6066_s13 = sadd.s32 1, %s5897_s27   ;;  %s60_s16 = sadd.s32 1, %s5893_s26 }
  0x4e   : > { %s57_s15 = ssub.s32 %s5897_s27, %s6066_s13  ;;  %p67_p6 = scmp.ne.s32.totalorder %s5893_s26, %s5889_s25 }
  0x4f   : > { %p58_p13 = scmp.eq.s32.totalorder %s57_s15, 0  ;;  %p68_p10 = scmp.eq.s32.totalorder %s5897_s27, 0 }
  0x50   : > { %p7069_p5 = scmp.eq.s32.totalorder %s5977_s28, 1  ;;  %p5471_p9 = scmp.lt.s32.totalorder %s5897_s27, 2 }
  0x51   : > { %s6075_s17 = scalar_select %p58_p13, %s5893_s26, %s60_s16  }
  0x52   : > { %p69_p3 = por %p68_p10, %p67_p6  ;;  %p6079_p7 = por %p7069_p5, %p67_p6 }
  0x53   : > { %7068 = sst [smem:[#allocation18_spill]] %s6075_s17  ;;  %s6085_s12 = sand.u32 1, %s5893_s26  }
  0x54   : > { %s7070_s18 = scalar_select %p6079_p7, 1, 0 }
  0x55   : > { %s5433_s14 = smul.u32 288, %s6085_s12  ;;  %p6089_p11 = pnand %p5471_p9, %p69_p3 }
  0x56   : > { %s5434_s19 = smul.u32 4608, %s5897_s27  ;;  %s7072_s1 = sld [smem:[#allocation20_spill]] }
  0x57   : > { %s277_s23 = scalar_lea.vmem [#allocation3], %s5433_s14  ;;  %s274_s15 = scalar_lea.sflag [#allocation4], %s6085_s12 }
  0x58   : > { %s284_s29 = sshll.u32 %s277_s23, 4  ;;  %p5761_p0 = pneg %p6089_p11  ;;  %s6098_s29 = int_to_ptr.vmem [resolvable:$true] %s284_s29 }
  0x5c   : > { %s6096_s22 = scalar_lea.hbm %s7072_s1, %s5434_s19  ;;  %s5764_s11 = scalar_lea.hbm %s7072_s1, 9216 }
  0x5d   : > { %s5759_s16 = scalar_lea.hbm %s6096_s22, 4608  ;;  %p5765_p13 = scmp.lt.u32.totalorder %s6096_s22, %s7072_s1 }
  0x5e   : > { %p5760_p12 = scmp.ne.s32.totalorder %s6096_s22, %s5759_s16  ;;  %p5766_p6 = scmp.lt.u32.totalorder %s5764_s11, %s5759_s16 }
  0x5f   : > { %p5768_p3 = scmp.lt.u32.totalorder %s5759_s16, %s6096_s22 }
  0x60   : > { %p5762_p2 = pnand %p5761_p0, %p5760_p12  ;;  %p5767_p10 = por %p5766_p6, %p5765_p13 }
  0x62   : > { %p5763_p1 = pneg %p5762_p2  ;;  %p5769_p5 = por %p5768_p3, %p5767_p10 }
  0x64   : > { %p5770_p9 = pnand %p5769_p5, %p5763_p1 }
  0x66   : > { %5773 = shalt.err (!%p5770_p9)
}
  0x67   : > { %s5774_s14 = scalar_lea.vmem %s6098_s29, 4608  ;;  %s5905_s23 = smov [#allocation3]  }
  0x68   : > { %p5775_p12 = scmp.ne.s32.totalorder %s6098_s29, %s5774_s14  ;;  %s5779_s19 = sshll.u32 %s5905_s23, 4  ;;  %s5780_s19 = int_to_ptr.vmem [resolvable:$false] %s5779_s19 }
  0x69   : > { %s5781_s4 = scalar_lea.vmem %s5780_s19, 9216  ;;  %p5782_p4 = scmp.lt.s32.totalorder %s6098_s29, %s5780_s19 }
  0x6a   : > { %p5777_p2 = pnand %p5775_p12, %p5761_p0  ;;  %p5783_p13 = scmp.lt.s32.totalorder %s5781_s4, %s5774_s14 }
  0x6c   : > { %p5778_p7 = pneg %p5777_p2  ;;  %p5784_p6 = por %p5783_p13, %p5782_p4 }
  0x6e   : > { %p5785_p10 = pnand %p5784_p6, %p5778_p7 }
  0x70   : > { %5788 = shalt.err (!%p5785_p10)
}
  0x71   : > { %s5906_s5 = smov 128   ;;  %s5907_s16 = smov 8  }
  0x72   : > { %5461 = dma.hbm_to_vmem [thread:$0]  (!%p6089_p11), %s6096_s22, 4608, %s6098_s29, %s274_s15, %s5906_s5, %s5906_s5, %s5907_s16  }
  0x73   : > { %s4386_s21 = sshll.u32 %s6085_s12, 6  ;;  %s4653_s11 = sshll.u32 %s5897_s27, 10 }
  0x74   : > { %s6134_s19 = scalar_lea.hbm %s7048_s2, %s4653_s11  ;;  %s298_s4 = scalar_lea.vmem [#allocation6], %s4386_s21 }
  0x75   : > { %s305_s10 = sshll.u32 %s298_s4, 4  ;;  %s7073_s1 = sand.u32 1, %s5897_s27   ;;  %s6136_s10 = int_to_ptr.vmem [resolvable:$true] %s305_s10 }
  0x76   : > { %s6140_s17 = scalar_lea.sflag [#allocation7], %s7073_s1  ;;  %s5789_s26 = scalar_lea.hbm %s6134_s19, 1024 }
  0x77   : > { %p5790_p4 = scmp.ne.s32.totalorder %s6134_s19, %s5789_s26  ;;  %s5794_s29 = scalar_lea.hbm %s7048_s2, 2048 }
  0x78   : > { %p5795_p3 = scmp.lt.u32.totalorder %s6134_s19, %s7048_s2  ;;  %p5796_p5 = scmp.lt.u32.totalorder %s5794_s29, %s5789_s26 }
  0x79   : > { %p5792_p7 = pnand %p5790_p4, %p5761_p0  ;;  %p5798_p12 = scmp.lt.u32.totalorder %s5789_s26, %s6134_s19 }
  0x7a   : > { %p5797_p9 = por %p5796_p5, %p5795_p3 }
  0x7b   : > { %p5793_p1 = pneg %p5792_p7 }
  0x7c   : > { %p5799_p2 = por %p5798_p12, %p5797_p9 }
  0x7e   : > { %p5800_p13 = pnand %p5799_p2, %p5793_p1 }
  0x80   : > { %5803 = shalt.err (!%p5800_p13)
}
  0x81   : > { %s5804_s1 = scalar_lea.vmem %s6136_s10, 1024  ;;  %s5908_s16 = smov [#allocation6]  }
  0x82   : > { %p5805_p6 = scmp.ne.s32.totalorder %s6136_s10, %s5804_s1  ;;  %s5809_s21 = sshll.u32 %s5908_s16, 4  ;;  %s5810_s21 = int_to_ptr.vmem [resolvable:$false] %s5809_s21 }
  0x83   : > { %s5811_s11 = scalar_lea.vmem %s5810_s21, 2048  ;;  %p5812_p7 = scmp.lt.s32.totalorder %s6136_s10, %s5810_s21 }
  0x84   : > { %p5807_p10 = pnand %p5805_p6, %p5761_p0  ;;  %p5813_p3 = scmp.lt.s32.totalorder %s5811_s11, %s5804_s1 }
  0x86   : > { %p5808_p4 = pneg %p5807_p10  ;;  %p5814_p5 = por %p5813_p3, %p5812_p7 }
  0x88   : > { %p5815_p9 = pnand %p5814_p5, %p5808_p4 }
  0x8a   : > { %5818 = shalt.err (!%p5815_p9)
}
  0x8b   : > { %s5909_s26 = smov 256   ;;  %s5910_s23 = smov 16  }
  0x8c   : > { %5464 = dma.hbm_to_vmem [thread:$0]  (!%p6089_p11), %s6134_s19, 1024, %s6136_s10, %s6140_s17, %s5909_s26, %s5909_s26, %s5910_s23  }
  0x8d   : > { %317 = sbr.rel (%p5996_p8) target bundleno = 1435 (0x59b), region = 48 }
  0x94   : > { %s6169_s14 = sand.u32 1, %s5889_s25   ;;  %p7074_p0 = scmp.ne.s32.totalorder %s7062_s30, 0 }
  0x95   : > { %s5435_s4 = smul.u32 288, %s6169_s14  ;;  %s320_s12 = scalar_lea.sflag [#allocation4], %s6169_s14 }
  0x97   : > { %s6173_s22 = scalar_lea.vmem [#allocation3], %s5435_s4 }
  0x98   : > { %5864 = dma.done.wait (%p7074_p0), %s320_s12, 4608  }
  0x99   : > { %5866 = vsyncadd (%p7074_p0), %s320_s12, 4294962688  ;;  %s328_s9 = sand.u32 1, %s5977_s28   ;;  %s4390_s17 = sshll.u32 %s6169_s14, 6 }
  0x9a   : > { %s329_s20 = scalar_lea.sflag [#allocation7], %s328_s9  ;;  %s6183_s10 = scalar_lea.vmem [#allocation6], %s4390_s17 }
  0x9b   : > { %5868 = dma.done.wait (%p7074_p0), %s329_s20, 1024  }
  0x9c   : > { %5870 = vsyncadd (%p7074_p0), %s329_s20, 4294966272  ;;  %p7075_p8 = scmp.eq.s32.totalorder %s5977_s28, 0 }
  0x9e   : > { %5872 = dma.done.wait (%p7075_p8), [#allocation7], 1536   ;;  %p7076_p11 = pmov %p7075_p8 }
  0x9f   : > { %p7077_p1 = pmov %p7075_p8 }
  0xa0   : > { %5874 = vsyncadd (%p7076_p11), [#allocation7], 4294965760 }
  0xa1   : > { %5876 = dma.done.wait (%p7077_p1), [#allocation10], 2304   ;;  %p7078_p12 = pmov %p7077_p1 }
  0xa2   : > { %p381_p2 = scmp.lt.s32.totalorder %s5977_s28, 1  ;;  %v5911_v0 = vmov 0   ;;  %vm502_vm0 = vcmask 1043456   ;;  %v5539_v13 = vld [vmem:[%s6173_s22 + $0x4] ss:$8 sps:$4 sm:$0xff]   ;;  %v5540_v14 = vld [vmem:[%s7049_s3] sm:$0xff]  }
  0xa3   : > { %5878 = vsyncadd (%p7078_p12), [#allocation10], 4294964992  ;;  %541 = vmatprep.mubr.bf16.mxu0 %v5911_v0  ;;  %5521 = vset.pattern.permute.xlu0 %v5911_v0  ;;  %v5537_v15 = vld [vmem:[%s6173_s22] ss:$8 sps:$4 sm:$0xff]   ;;  %vm483_vm1 = vcmask 588800   ;;  %v5556_v19 = vld [vmem:[%s7049_s3 + $0x8] sm:$0xff]  }
  0xa4   : > { %s382_s30 = scalar_select %p381_p2, %s5977_s28, 1  ;;  %5522 = vset.pattern.permute.xlu1 %v5911_v0  ;;  %v5543_v16 = vld [vmem:[%s6173_s22 + $0x14] ss:$8 sps:$4 sm:$0xff]   ;;  %v5541_v17 = vld [vmem:[%s6173_s22 + $0x10] ss:$8 sps:$4 sm:$0xff]   ;;  %v5563_v24 = vld [vmem:[%s7049_s3 + $0x10] sm:$0xff]  }
  0xa5   : > { %v5546_v18 = vld [vmem:[%s6173_s22 + $0x24] ss:$8 sps:$4 sm:$0xff]   ;;  %v5544_v20 = vld [vmem:[%s6173_s22 + $0x20] ss:$8 sps:$4 sm:$0xff]   ;;  %v5549_v21 = vld [vmem:[%s6173_s22 + $0x34] ss:$8 sps:$4 sm:$0xff]  }
  0xa6   : > { %s5436_s19 = smul.u32 72, %s382_s30  ;;  %v5547_v22 = vld [vmem:[%s6173_s22 + $0x30] ss:$8 sps:$4 sm:$0xff]   ;;  %v5552_v23 = vld [vmem:[%s6173_s22 + $0x44] ss:$8 sps:$4 sm:$0xff]   ;;  %vm894_vm2 = vcmask 261120  }
  0xa7   : > { %v5550_v25 = vld [vmem:[%s6173_s22 + $0x40] ss:$8 sps:$4 sm:$0xff]   ;;  %v5555_v26 = vld [vmem:[%s6173_s22 + $0x54] ss:$8 sps:$4 sm:$0xff]   ;;  %v5553_v27 = vld [vmem:[%s6173_s22 + $0x50] ss:$8 sps:$4 sm:$0xff]  }
  0xa8   : > { %s385_s5 = scalar_lea.vmem %s7046_s0, %s5436_s19  ;;  %v5559_v28 = vld [vmem:[%s6173_s22 + $0x64] ss:$8 sps:$4 sm:$0xff]   ;;  %v5557_v30 = vld [vmem:[%s6173_s22 + $0x60] ss:$8 sps:$4 sm:$0xff]   ;;  %v5562_v31 = vld [vmem:[%s6173_s22 + $0x74] ss:$8 sps:$4 sm:$0xff]  }
  0xa9   : > { %v5523_v1 = vld [vmem:[%s385_s5 + $0x4] ss:$8 sps:$4 sm:$0xff]   ;;  %v5525_v2 = vld [vmem:[%s385_s5] ss:$8 sps:$4 sm:$0xff]   ;;  %v5526_v3 = vld [vmem:[%s385_s5 + $0x14] ss:$8 sps:$4 sm:$0xff]  }
  0xaa   : > { %509 = vmatprep.subr.bf16.mxu0 %v5523_v1  ;;  %v5528_v4 = vld [vmem:[%s385_s5 + $0x10] ss:$8 sps:$4 sm:$0xff]   ;;  %v5529_v5 = vld [vmem:[%s385_s5 + $0x24] ss:$8 sps:$4 sm:$0xff]   ;;  %v5531_v6 = vld [vmem:[%s385_s5 + $0x20] ss:$8 sps:$4 sm:$0xff]  }
  0xab   : > { %510 = vmatpush1.bf16.msra.mxu0 %v5525_v2  ;;  %v5532_v7 = vld [vmem:[%s385_s5 + $0x34] ss:$8 sps:$4 sm:$0xff]   ;;  %v407_v8 = vld [vmem:[%s385_s5 + $0x40] sm:$0xff]  ;;  %v5534_v9 = vld [vmem:[%s385_s5 + $0x30] ss:$8 sps:$4 sm:$0xff]   ;;  %vm1251_vm3 = vcmask 254976  }
  0xac   : > { %511 = vmatprep.subr.bf16.mxu0 %v5526_v3  ;;  %v4410_v10 = vcombine.high %v407_v8, %v407_v8  ;;  %v4409_v11 = vcombine.low %v407_v8, %v407_v8  ;;  %v5570_v29 = vld [vmem:[%s7049_s3 + $0x18] sm:$0xff]   ;;  %v5560_v32 = vld [vmem:[%s6173_s22 + $0x70] ss:$8 sps:$4 sm:$0xff]   ;;  %v1055_v34 = vld [vmem:[%s7052_s6 + $0x10] sm:$0xff]  ;;  %s4240_s20 = scalar_lea.sflag [#allocation5], %s6169_s14  ;;  %p7081_p6 = scmp.ne.s32.totalorder %s7070_s18, 0 }
  0xad   : > { %v1053_v33 = vld [vmem:[%s7052_s6] sm:$0xff]  ;;  %v5566_v35 = vld [vmem:[%s6173_s22 + $0x84] ss:$8 sps:$4 sm:$0xff]   ;;  %v1054_v36 = vld [vmem:[%s7052_s6 + $0x8] sm:$0xff]  ;;  %1093 = vperm.xlu1 %5522, %v1055_v34  }
  0xae   : > { %v504_v12 = vsel %vm502_vm0, %v4409_v11, 0  ;;  %1083 = vperm.xlu0 %5521, %v1053_v33   ;;  %v1056_v37 = vld [vmem:[%s7052_s6 + $0x18] sm:$0xff]  ;;  %v5577_v38 = vld [vmem:[%s7049_s3 + $0x20] sm:$0xff]   ;;  %v5584_v43 = vld [vmem:[%s7049_s3 + $0x28] sm:$0xff]  }
  0xaf   : > { %512 = vmatpush1.bf16.msra.mxu0 %v5528_v4  ;;  %v5564_v39 = vld [vmem:[%s6173_s22 + $0x80] ss:$8 sps:$4 sm:$0xff]   ;;  %v5569_v40 = vld [vmem:[%s6173_s22 + $0x94] ss:$8 sps:$4 sm:$0xff]   ;;  %v5567_v41 = vld [vmem:[%s6173_s22 + $0x90] ss:$8 sps:$4 sm:$0xff]  }
  0xb0   : > { %513 = vmatprep.subr.bf16.mxu0 %v5529_v5  ;;  %v5573_v42 = vld [vmem:[%s6173_s22 + $0xa4] ss:$8 sps:$4 sm:$0xff]   ;;  %v5571_v44 = vld [vmem:[%s6173_s22 + $0xa0] ss:$8 sps:$4 sm:$0xff]   ;;  %v5576_v46 = vld [vmem:[%s6173_s22 + $0xb4] ss:$8 sps:$4 sm:$0xff]  }
  0xb1   : > { %1098 = vperm.xlu1 %5522, %v1056_v37   ;;  %v5593_v45 = vld [vmem:[#allocation8 + $0x4] ss:$12 sps:$4 sm:$0xff]   ;;  %v5578_v49 = vld [vmem:[%s6173_s22 + $0xc0] ss:$8 sps:$4 sm:$0xff]   ;;  %v5583_v50 = vld [vmem:[%s6173_s22 + $0xd4] ss:$8 sps:$4 sm:$0xff]  }
  0xb2   : > { %1088 = vperm.xlu0 %5521, %v1054_v36   ;;  %v5574_v47 = vld [vmem:[%s6173_s22 + $0xb0] ss:$8 sps:$4 sm:$0xff]   ;;  %v5580_v48 = vld [vmem:[%s6173_s22 + $0xc4] ss:$8 sps:$4 sm:$0xff]   ;;  %v5585_v53 = vld [vmem:[%s6173_s22 + $0xe0] ss:$8 sps:$4 sm:$0xff]  }
  0xb3   : > { %514 = vmatpush1.bf16.msra.mxu0 %v5531_v6  ;;  %v5581_v51 = vld [vmem:[%s6173_s22 + $0xd0] ss:$8 sps:$4 sm:$0xff]   ;;  %v5587_v52 = vld [vmem:[%s6173_s22 + $0xe4] ss:$8 sps:$4 sm:$0xff]   ;;  %v5590_v54 = vld [vmem:[%s6173_s22 + $0xf4] ss:$8 sps:$4 sm:$0xff]  }
  0xb4   : > { %515 = vmatprep.subr.bf16.mxu0 %v5532_v7  ;;  %v5588_v55 = vld [vmem:[%s6173_s22 + $0xf0] ss:$8 sps:$4 sm:$0xff]   ;;  %v5596_v56 = vld [vmem:[%s6173_s22 + $0x104] ss:$8 sps:$4 sm:$0xff]   ;;  %v5594_v58 = vld [vmem:[%s6173_s22 + $0x100] ss:$8 sps:$4 sm:$0xff]  }
  0xb5   : > { %v5591_v57 = vld [vmem:[#allocation8] ss:$12 sps:$4 sm:$0xff]   ;;  %v5597_v59 = vld [vmem:[#allocation8 + $0x1c] ss:$12 sps:$4 sm:$0xff]   ;;  %v5603_v61 = vld [vmem:[%s6173_s22 + $0x110] ss:$8 sps:$4 sm:$0xff]  }
  0xb6   : > { %v5605_v60 = vld [vmem:[%s6173_s22 + $0x114] ss:$8 sps:$4 sm:$0xff]   ;;  %v5599_v62 = vld [vmem:[#allocation8 + $0x18] ss:$12 sps:$4 sm:$0xff]   ;;  %v5610_v5 = vld [vmem:[#allocation8 + $0x20] ss:$12 sps:$4 sm:$0xff]  }
  0xb7   : > { %516 = vmatpush1.bf16.msra.mxu0 %v5534_v9  ;;  %v5600_v63 = vld [vmem:[#allocation8 + $0x34] ss:$12 sps:$4 sm:$0xff]   ;;  %v5602_v1 = vld [vmem:[#allocation8 + $0x30] ss:$12 sps:$4 sm:$0xff]   ;;  %v5606_v2 = vld [vmem:[#allocation8 + $0x4c] ss:$12 sps:$4 sm:$0xff]  }
  0xb8   : > { %4411 = vmatprep.subr.msk.bf16.mxu0 %vm502_vm0, %v4410_v10  ;;  %v5608_v3 = vld [vmem:[#allocation8 + $0x48] ss:$12 sps:$4 sm:$0xff]   ;;  %v5611_v6 = vld [vmem:[#allocation8 + $0x38] ss:$12 sps:$4 sm:$0xff]   ;;  %v5612_v7 = vld [vmem:[#allocation8 + $0x50] ss:$12 sps:$4 sm:$0xff]  }
  0xb9   : > { %v5609_v4 = vld [vmem:[#allocation8 + $0x8] ss:$12 sps:$4 sm:$0xff]   ;;  %s6968_s22 = scalar_lea.vmem [#allocation11], %s4390_s17  ;;  %s4654_s17 = sshll.u32 %s5977_s28, 10 }
  0xba   : > { %s4253_s23 = sshll.u32 %s6968_s22, 4  ;;  %s6999_s9 = scalar_lea.hbm %s7053_s7, %s4654_s17  ;;  %s7001_s23 = int_to_ptr.vmem [resolvable:$true] %s4253_s23 }
  0xbb   : > { %518 = vmatpush1.bf16.msra.mxu0 %v504_v12  ;;  %s5819_s30 = scalar_lea.vmem %s7001_s23, 1024  ;;  %s5913_s28 = smov [#allocation11]  }
  0xbc   : > { %907 = vmatprep.subr.bf16.mxu0 %v5539_v13  ;;  %p5820_p13 = scmp.ne.s32.totalorder %s7001_s23, %s5819_s30 }
  0xbe   : > { %4412 = vmatmul.mubr.msk.bf16.vlgmr.msra.gmra.mrb[0].mxu0 %vm483_vm1, %v5540_v14  ;;  %p5821_p10 = pnand %p5820_p13, %p7081_p6 }
  0xbf   : > { %908 = vmatpush1.bf16.msra.mxu0 %v5537_v15  ;;  %551 = vmatprep.mubr.bf16.mxu0 %v5911_v0 }
  0xc0   : > { %909 = vmatprep.subr.bf16.mxu0 %v5543_v16  ;;  %p5822_p4 = pneg %p5821_p10 }
  0xc3   : > { %910 = vmatpush1.bf16.msra.mxu0 %v5541_v17 }
  0xc4   : > { %911 = vmatprep.subr.bf16.mxu0 %v5546_v18 }
  0xc6   : > { %4413 = vmatmul.mubr.msk.bf16.gmra.mrb[4].mxu0 %vm483_vm1, %v5556_v19 }
  0xc7   : > { %912 = vmatpush1.bf16.msra.mxu0 %v5544_v20  ;;  %561 = vmatprep.mubr.bf16.mxu0 %v5911_v0 }
  0xc8   : > { %913 = vmatprep.subr.bf16.mxu0 %v5549_v21 }
  0xcb   : > { %914 = vmatpush1.bf16.msra.mxu0 %v5547_v22 }
  0xcc   : > { %915 = vmatprep.subr.bf16.mxu0 %v5552_v23 }
  0xce   : > { %4414 = vmatmul.mubr.msk.bf16.gmra.mrb[8].mxu0 %vm483_vm1, %v5563_v24 }
  0xcf   : > { %916 = vmatpush1.bf16.msra.mxu0 %v5550_v25  ;;  %571 = vmatprep.mubr.bf16.mxu0 %v5911_v0 }
  0xd0   : > { %917 = vmatprep.subr.bf16.mxu0 %v5555_v26 }
  0xd3   : > { %918 = vmatpush1.bf16.msra.mxu0 %v5553_v27 }
  0xd4   : > { %919 = vmatprep.subr.bf16.mxu0 %v5559_v28 }
  0xd6   : > { %4415 = vmatmul.mubr.msk.bf16.gmra.mrb[12].mxu0 %vm483_vm1, %v5570_v29 }
  0xd7   : > { %920 = vmatpush1.bf16.msra.mxu0 %v5557_v30  ;;  %581 = vmatprep.mubr.bf16.mxu0 %v5911_v0 }
  0xd8   : > { %921 = vmatprep.subr.bf16.mxu0 %v5562_v31 }
  0xdb   : > { %922 = vmatpush1.bf16.msra.mxu0 %v5560_v32 }
  0xdc   : > { %923 = vmatprep.subr.bf16.mxu0 %v5566_v35 }
  0xde   : > { %4416 = vmatmul.mubr.msk.bf16.gmra.mrb[16].mxu0 %vm483_vm1, %v5577_v38 }
  0xdf   : > { %924 = vmatpush1.bf16.msra.mxu0 %v5564_v39  ;;  %591 = vmatprep.mubr.bf16.mxu0 %v5911_v0 }
  0xe0   : > { %925 = vmatprep.subr.bf16.mxu0 %v5569_v40 }
  0xe3   : > { %926 = vmatpush1.bf16.msra.mxu0 %v5567_v41 }
  0xe4   : > { %927 = vmatprep.subr.bf16.mxu0 %v5573_v42 }
  0xe6   : > { %4417 = vmatmul.mubr.msk.bf16.gmra.mrb[20].mxu0 %vm483_vm1, %v5584_v43 }
  0xe7   : > { %928 = vmatpush1.bf16.msra.mxu0 %v5571_v44  ;;  %939 = vmatprep.mubr.bf16.mxu0 %v5593_v45 }
  0xe8   : > { %929 = vmatprep.subr.bf16.mxu0 %v5576_v46 }
  0xeb   : > { %930 = vmatpush1.bf16.msra.mxu0 %v5574_v47 }
  0xec   : > { %931 = vmatprep.subr.bf16.mxu0 %v5580_v48 }
  0xef   : > { %932 = vmatpush1.bf16.msra.mxu0 %v5578_v49 }
  0xf0   : > { %933 = vmatprep.subr.bf16.mxu0 %v5583_v50  ;;  %v5912_v50 = vmov 0.0  }
  0xf1   : > { %1253 = vst.msk [vmem:[#allocation2 + $0x18] sm:$0xff] %vm894_vm2, %v5912_v50  ;;  %1254 = vst.msk [vmem:[#allocation2 + $0x20] sm:$0xff] %vm894_vm2, %v5912_v50 }
  0xf2   : > { %1249 = vst.msk [vmem:[#allocation2] sm:$0xff] %vm894_vm2, %v5912_v50  ;;  %1250 = vst.msk [vmem:[#allocation2 + $0x8] sm:$0xff] %vm894_vm2, %v5912_v50 }
  0xf3   : > { %934 = vmatpush1.bf16.msra.mxu0 %v5581_v51  ;;  %1256 = vst.msk [vmem:[#allocation2 + $0x30] sm:$0xff] %vm894_vm2, %v5912_v50  ;;  %1257 = vst.msk [vmem:[#allocation2 + $0x38] sm:$0xff] %vm894_vm2, %v5912_v50 }
  0xf4   : > { %935 = vmatprep.subr.bf16.mxu0 %v5587_v52  ;;  %1259 = vst.msk [vmem:[#allocation2 + $0x48] sm:$0xff] %vm894_vm2, %v5912_v50  ;;  %1260 = vst.msk [vmem:[#allocation2 + $0x50] sm:$0xff] %vm894_vm2, %v5912_v50 }
  0xf5   : > { %1262 = vst.msk [vmem:[#allocation2 + $0x60] sm:$0xff] %vm894_vm2, %v5912_v50  ;;  %1263 = vst.msk [vmem:[#allocation2 + $0x68] sm:$0xff] %vm894_vm2, %v5912_v50 }
  0xf6   : > { %1265 = vst.msk [vmem:[#allocation2 + $0x78] sm:$0xff] %vm894_vm2, %v5912_v50  ;;  %1266 = vst.msk [vmem:[#allocation2 + $0x80] sm:$0xff] %vm894_vm2, %v5912_v50 }
  0xf7   : > { %936 = vmatpush1.bf16.msra.mxu0 %v5585_v53  ;;  %1268 = vst.msk [vmem:[#allocation2 + $0x90] sm:$0xff] %vm894_vm2, %v5912_v50  ;;  %1269 = vst.msk [vmem:[#allocation2 + $0x98] sm:$0xff] %vm894_vm2, %v5912_v50 }
  0xf8   : > { %937 = vmatprep.subr.bf16.mxu0 %v5590_v54  ;;  %1271 = vst.msk [vmem:[#allocation2 + $0xa8] sm:$0xff] %vm894_vm2, %v5912_v50  ;;  %1272 = vst.msk [vmem:[#allocation2 + $0xb0] sm:$0xff] %vm894_vm2, %v5912_v50 }
  0xf9   : > { %1274 = vst.msk [vmem:[#allocation2 + $0xc0] sm:$0xff] %vm894_vm2, %v5912_v50  ;;  %1275 = vst.msk [vmem:[#allocation2 + $0xc8] sm:$0xff] %vm894_vm2, %v5912_v50 }
  0xfa   : > { %1277 = vst.msk [vmem:[#allocation2 + $0xd8] sm:$0xff] %vm894_vm2, %v5912_v50  ;;  %1278 = vst.msk [vmem:[#allocation2 + $0xe0] sm:$0xff] %vm894_vm2, %v5912_v50 }
  0xfb   : > { %938 = vmatpush1.bf16.msra.mxu0 %v5588_v55  ;;  %1280 = vst.msk [vmem:[#allocation2 + $0xf0] sm:$0xff] %vm894_vm2, %v5912_v50  ;;  %1281 = vst.msk [vmem:[#allocation2 + $0xf8] sm:$0xff] %vm894_vm2, %v5912_v50 }
  0xfc   : > { %980 = vmatprep.subr.bf16.mxu0 %v5596_v56  ;;  %1283 = vst.msk [vmem:[#allocation2 + $0x108] sm:$0xff] %vm894_vm2, %v5912_v50  ;;  %1284 = vst.msk [vmem:[#allocation2 + $0x110] sm:$0xff] %vm894_vm2, %v5912_v50 }
  0xfd   : > { %1286 = vst.msk [vmem:[#allocation2 + $0x120] sm:$0xff] %vm894_vm2, %v5912_v50  ;;  %1287 = vst.msk [vmem:[#allocation2 + $0x128] sm:$0xff] %vm894_vm2, %v5912_v50 }
  0xfe   : > { %940 = vmatmul.mubr.bf16.vlgmr.msra.gmra.mrb[0].mxu0 %v5591_v57  ;;  %1289 = vst.msk [vmem:[#allocation2 + $0x138] sm:$0xff] %vm894_vm2, %v5912_v50  ;;  %1290 = vst.msk [vmem:[#allocation2 + $0x140] sm:$0xff] %vm894_vm2, %v5912_v50 }
  0xff   : > { %981 = vmatpush1.bf16.msra.mxu0 %v5594_v58  ;;  %949 = vmatprep.mubr.bf16.mxu0 %v5597_v59  ;;  %1292 = vst.msk [vmem:[#allocation2 + $0x150] sm:$0xff] %vm894_vm2, %v5912_v50  ;;  %1293 = vst.msk [vmem:[#allocation2 + $0x158] sm:$0xff] %vm894_vm2, %v5912_v50 }
 0x100   : > { %982 = vmatprep.subr.bf16.mxu0 %v5605_v60  ;;  %1295 = vst.msk [vmem:[#allocation2 + $0x168] sm:$0xff] %vm894_vm2, %v5912_v50  ;;  %1296 = vst.msk [vmem:[#allocation2 + $0x170] sm:$0xff] %vm894_vm2, %v5912_v50 }
 0x101   : > { %1298 = vst.msk [vmem:[#allocation2 + $0x180] sm:$0xff] %vm894_vm2, %v5912_v50  ;;  %1299 = vst.msk [vmem:[#allocation2 + $0x188] sm:$0xff] %vm894_vm2, %v5912_v50 }
 0x102   : > { %1301 = vst.msk [vmem:[#allocation2 + $0x198] sm:$0xff] %vm894_vm2, %v5912_v50  ;;  %1302 = vst.msk [vmem:[#allocation2 + $0x1a0] sm:$0xff] %vm894_vm2, %v5912_v50 }
 0x103   : > { %983 = vmatpush1.bf16.msra.mxu0 %v5603_v61  ;;  %1255 = vst.msk [vmem:[#allocation2 + $0x28] sm:$0x3] %vm1251_vm3, %v5912_v50  ;;  %1252 = vst.msk [vmem:[#allocation2 + $0x10] sm:$0x3] %vm1251_vm3, %v5912_v50 }
 0x104   : > { %1258 = vst.msk [vmem:[#allocation2 + $0x40] sm:$0x3] %vm1251_vm3, %v5912_v50  ;;  %1261 = vst.msk [vmem:[#allocation2 + $0x58] sm:$0x3] %vm1251_vm3, %v5912_v50 }
 0x105   : > { %1264 = vst.msk [vmem:[#allocation2 + $0x70] sm:$0x3] %vm1251_vm3, %v5912_v50  ;;  %1267 = vst.msk [vmem:[#allocation2 + $0x88] sm:$0x3] %vm1251_vm3, %v5912_v50 }
 0x106   : > { %950 = vmatmul.mubr.bf16.gmra.mrb[4].mxu0 %v5599_v62  ;;  %1270 = vst.msk [vmem:[#allocation2 + $0xa0] sm:$0x3] %vm1251_vm3, %v5912_v50  ;;  %1273 = vst.msk [vmem:[#allocation2 + $0xb8] sm:$0x3] %vm1251_vm3, %v5912_v50 }
 0x107   : > { %959 = vmatprep.mubr.bf16.mxu0 %v5600_v63  ;;  %1276 = vst.msk [vmem:[#allocation2 + $0xd0] sm:$0x3] %vm1251_vm3, %v5912_v50  ;;  %1279 = vst.msk [vmem:[#allocation2 + $0xe8] sm:$0x3] %vm1251_vm3, %v5912_v50 }
 0x108   : > { %1282 = vst.msk [vmem:[#allocation2 + $0x100] sm:$0x3] %vm1251_vm3, %v5912_v50  ;;  %1285 = vst.msk [vmem:[#allocation2 + $0x118] sm:$0x3] %vm1251_vm3, %v5912_v50 }
 0x109   : > { %1288 = vst.msk [vmem:[#allocation2 + $0x130] sm:$0x3] %vm1251_vm3, %v5912_v50  ;;  %1291 = vst.msk [vmem:[#allocation2 + $0x148] sm:$0x3] %vm1251_vm3, %v5912_v50 }
 0x10a   : > { %1294 = vst.msk [vmem:[#allocation2 + $0x160] sm:$0x3] %vm1251_vm3, %v5912_v50  ;;  %1297 = vst.msk [vmem:[#allocation2 + $0x178] sm:$0x3] %vm1251_vm3, %v5912_v50 }
 0x10b   : > { %1300 = vst.msk [vmem:[#allocation2 + $0x190] sm:$0x3] %vm1251_vm3, %v5912_v50  ;;  %1303 = vst.msk [vmem:[#allocation2 + $0x1a8] sm:$0x3] %vm1251_vm3, %v5912_v50  ;;  %v1057_v50 = vld [vmem:[%s7052_s6 + $0x20] sm:$0xff] }
 0x10e   : > { %960 = vmatmul.mubr.bf16.gmra.mrb[8].mxu0 %v5602_v1 }
 0x10f   : > { %969 = vmatprep.mubr.bf16.mxu0 %v5606_v2 }
 0x116   : > { %970 = vmatmul.mubr.bf16.gmra.mrb[12].mxu0 %v5608_v3  ;;  %v1233_v3 = vld [vmem:[%s6183_s10] sm:$0xff] }
 0x117   : > { %1012 = vmatprep.mubr.bf16.mxu0 %v5911_v0 }
 0x11e   : > { %4466 = vmatmul.mubr.msk.bf16.vlgmr.msra.gmra.mrb[0].mxu0 %vm894_vm2, %v5609_v4 }
 0x11f   : > { %1022 = vmatprep.mubr.bf16.mxu0 %v5911_v0 }
 0x126   : > { %4467 = vmatmul.mubr.msk.bf16.gmra.mrb[4].mxu0 %vm894_vm2, %v5610_v5 }
 0x127   : > { %1032 = vmatprep.mubr.bf16.mxu0 %v5911_v0 }
 0x12c   : > { %v1094_v27 = vpop.permute.xlu1 %1093 }
 0x12e   : > { %4468 = vmatmul.mubr.msk.bf16.gmra.mrb[8].mxu0 %vm894_vm2, %v5611_v6  ;;  %v1234_v6 = vld [vmem:[%s6183_s10 + $0x8] sm:$0xff] }
 0x12f   : > { %1042 = vmatprep.mubr.bf16.mxu0 %v5911_v0  ;;  %v1084_v0 = vpop.permute.xlu0 %1083 }
 0x130   : > { %v1099_v33 = vpop.permute.xlu1 %1098 }
 0x133   : > { %v1089_v19 = vpop.permute.xlu0 %1088 }
 0x136   : > { %4469 = vmatmul.mubr.msk.bf16.gmra.mrb[12].mxu0 %vm894_vm2, %v5612_v7 }
 0x1b1   : > { %v6290_v8 = vpop.f32.mrb[16].mxu0 }
 0x1b2   : > { %v6292_v9 = vpop.f32.mrb[17].mxu0 }
 0x1b3   : > { %v6294_v10 = vpop.f32.mrb[18].mxu0 }
 0x1b4   : > { %v6296_v11 = vpop.f32.mrb[19].mxu0 }
 0x1b9   : > { %v6298_v12 = vpop.f32.mrb[20].mxu0 }
 0x1ba   : > { %v6300_v13 = vpop.f32.mrb[21].mxu0 }
 0x1bb   : > { %v6302_v14 = vpop.f32.mrb[22].mxu0 }
 0x1bc   : > { %v6304_v15 = vpop.f32.mrb[23].mxu0 }
 0x1bd   : > { %7079 = vst [vmem:[#allocation19_spill] sm:$0xff] %v6304_v15 }
 0x1f1   : > { %v1014_v16 = vpop.f32.mrb[0].mxu0 }
 0x1f2   : > { %v1121_v17 = vadd.f32 %v1084_v0, %v1014_v16  ;;  %v1016_v18 = vpop.f32.mrb[1].mxu0 }
 0x1f3   : > { %v1122_v20 = vadd.f32 %v1084_v0, %v1016_v18  ;;  %v1018_v21 = vpop.f32.mrb[2].mxu0 }
 0x1f4   : > { %v4470_v22 = vmul.f32 -1.442695, %v1121_v17  ;;  %v1123_v23 = vadd.f32 %v1089_v19, %v1018_v21  ;;  %v1020_v24 = vpop.f32.mrb[3].mxu0  ;;  %v1236_v21 = vld [vmem:[%s6183_s10 + $0x18] sm:$0xff] }
 0x1f5   : > { %v4471_v25 = vmul.f32 -1.442695, %v1122_v20  ;;  %v1124_v26 = vadd.f32 %v1089_v19, %v1020_v24  ;;  %v1235_v19 = vld [vmem:[%s6183_s10 + $0x10] sm:$0xff]  ;;  %v1237_v24 = vld [vmem:[%s6183_s10 + $0x20] sm:$0xff] }
 0x1f6   : > { %5631 = vpow2.f32 %v4470_v22  ;;  %v4472_v28 = vmul.f32 -1.442695, %v1123_v23 }
 0x1f7   : > { %5633 = vpow2.f32 %v4471_v25  ;;  %v4473_v29 = vmul.f32 -1.442695, %v1124_v26  ;;  %v1238_v25 = vld [vmem:[%s6183_s10 + $0x28] sm:$0xff] }
 0x1f8   : > { %5635 = vpow2.f32 %v4472_v28 }
 0x1f9   : > { %5637 = vpow2.f32 %v4473_v29  ;;  %v1024_v30 = vpop.f32.mrb[4].mxu0 }
 0x1fa   : > { %v1125_v31 = vadd.f32 %v1094_v27, %v1024_v30  ;;  %v1026_v32 = vpop.f32.mrb[5].mxu0 }
 0x1fb   : > { %v1126_v34 = vadd.f32 %v1094_v27, %v1026_v32  ;;  %v1028_v35 = vpop.f32.mrb[6].mxu0  ;;  %v5613_v27 = vld [vmem:[#allocation9 + $0x10] sm:$0xff]  }
 0x1fc   : > { %v4474_v36 = vmul.f32 -1.442695, %v1125_v31  ;;  %v1127_v37 = vadd.f32 %v1099_v33, %v1028_v35  ;;  %v1030_v38 = vpop.f32.mrb[7].mxu0  ;;  %v1239_v32 = vld [vmem:[%s6183_s10 + $0x30] sm:$0xff]  ;;  %4817 = vmatprep.subr.bf16.mxu0 %v5613_v27  ;;  %v5614_v35 = vld [vmem:[#allocation9 + $0x18] sm:$0xff]  }
 0x1fd   : > { %v4475_v39 = vmul.f32 -1.442695, %v1126_v34  ;;  %v1128_v40 = vadd.f32 %v1099_v33, %v1030_v38  ;;  %v1240_v34 = vld [vmem:[%s6183_s10 + $0x38] sm:$0xff]  ;;  %4818 = vmatpush3.bf16.msra.mxu0 %v5613_v27 }
 0x1fe   : > { %5639 = vpow2.f32 %v4474_v36  ;;  %v4476_v41 = vmul.f32 -1.442695, %v1127_v37  ;;  %4819 = vmatprep.subr.bf16.mxu0 %v5614_v35  ;;  %v1453_v38 = vld [vmem:[#allocation2 + $0x1] sm:$0xff] }
 0x1ff   : > { %5641 = vpow2.f32 %v4475_v39  ;;  %v4477_v42 = vmul.f32 -1.442695, %v1128_v40  ;;  %v1454_v39 = vld [vmem:[#allocation2 + $0x9] sm:$0xff] }
 0x200   : > { %v5632_v43 = vpop.eup %5631  ;;  %5643 = vpow2.f32 %v4476_v41  ;;  %v1485_v40 = vpack.c.bf16 %v1454_v39, %v1453_v38  ;;  %v6439_v41 = vld [vmem:[#allocation9 + $0x30] sm:$0xff]  }
 0x201   : > { %v5634_v44 = vpop.eup %5633  ;;  %v1161_v45 = vadd.f32 1.0, %v5632_v43  ;;  %5645 = vpow2.f32 %v4477_v42  ;;  %v6306_v46 = vpop.f32.mrb[8].mxu0  ;;  %4820 = vmatpush3.bf16.msra.mxu0 %v5614_v35  ;;  %5141 = vmatprep.subr.bf16.mxu1 %v6439_v41  ;;  %v6442_v42 = vld [vmem:[#allocation9 + $0x38] sm:$0xff]   ;;  %v6447_v43 = vld [vmem:[#allocation9 + $0x40] sm:$0xff]  }
 0x202   : > { %v5636_v47 = vpop.eup %5635  ;;  %v1162_v48 = vadd.f32 1.0, %v5634_v44  ;;  %v6308_v49 = vpop.f32.mrb[9].mxu0  ;;  %4821 = vmatprep.mubr.msk.bf16.mxu0 %vm894_vm2, %v1485_v40  ;;  %5143 = vmatpush3.bf16.msra.mxu1 %v6439_v41  ;;  %v1058_v44 = vld [vmem:[%s7052_s6 + $0x28] sm:$0xff] }
 0x203   : > { %v5638_v51 = vpop.eup %5637  ;;  %5647 = vrcp.f32 %v1161_v45  ;;  %v1163_v52 = vadd.f32 1.0, %v5636_v47  ;;  %v6382_v53 = vpop.f32.mrb[10].mxu0  ;;  %5142 = vmatprep.subr.bf16.mxu1 %v6442_v42  ;;  %v1060_v45 = vld [vmem:[%s7052_s6 + $0x38] sm:$0xff]  ;;  %v5619_v47 = vld [vmem:[#allocation9] sm:$0xff]  }
 0x204   : > { %5649 = vrcp.f32 %v1162_v48  ;;  %v1164_v54 = vadd.f32 1.0, %v5638_v51  ;;  %v6384_v55 = vpop.f32.mrb[11].mxu0  ;;  %v1062_v48 = vld [vmem:[%s7052_s6 + $0x48] sm:$0xff]  ;;  %4853 = vmatprep.subr.bf16.mxu0 %v5619_v47  ;;  %v1064_v51 = vld [vmem:[%s7052_s6 + $0x58] sm:$0xff] }
 0x205   : > { %5651 = vrcp.f32 %v1163_v52  ;;  %v1059_v52 = vld [vmem:[%s7052_s6 + $0x30] sm:$0xff] }
 0x206   : > { %5653 = vrcp.f32 %v1164_v54  ;;  %5144 = vmatpush3.bf16.msra.mxu1 %v6442_v42  ;;  %v1061_v54 = vld [vmem:[%s7052_s6 + $0x40] sm:$0xff] }
 0x207   : > { %4961 = vmatprep.subr.bf16.mxu1 %v6447_v43 }
 0x208   : > { %v5640_v56 = vpop.eup %5639 }
 0x209   : > { %v5642_v57 = vpop.eup %5641  ;;  %v1165_v58 = vadd.f32 1.0, %v5640_v56  ;;  %v6386_v59 = vpop.f32.mrb[12].mxu0  ;;  %v1063_v56 = vld [vmem:[%s7052_s6 + $0x50] sm:$0xff] }
 0x20a   : > { %v5644_v60 = vpop.eup %5643  ;;  %v1166_v61 = vadd.f32 1.0, %v5642_v57  ;;  %v6388_v62 = vpop.f32.mrb[13].mxu0 }
 0x20b   : > { %v5646_v63 = vpop.eup %5645  ;;  %5655 = vrcp.f32 %v1165_v58  ;;  %v1167_v1 = vadd.f32 1.0, %v5644_v60  ;;  %v6390_v2 = vpop.f32.mrb[14].mxu0 }
 0x20c   : > { %5657 = vrcp.f32 %v1166_v61  ;;  %v1168_v4 = vadd.f32 1.0, %v5646_v63  ;;  %v6393_v5 = vpop.f32.mrb[15].mxu0 }
 0x20d   : > { %v5648_v7 = vpop.eup %5647  ;;  %5659 = vrcp.f32 %v1167_v1 }
 0x20e   : > { %v5650_v0 = vpop.eup %5649  ;;  %5661 = vrcp.f32 %v1168_v4  ;;  %v1241_v16 = vmul.f32 %v5648_v7, %v1233_v3 }
 0x20f   : > { %v5652_v17 = vpop.eup %5651  ;;  %v1242_v18 = vmul.f32 %v5650_v0, %v1234_v6 }
 0x210   : > { %v5654_v20 = vpop.eup %5653  ;;  %1304 = vxpose.xlu0.b32.start [1/4] (short) %v1241_v16, 128  ;;  %v1243_v22 = vmul.f32 %v5652_v17, %v1235_v19  ;;  %v5620_v16 = vld [vmem:[#allocation9 + $0x8] sm:$0xff]  }
 0x211   : > { %1336 = vxpose.xlu1.b32.start [1/4] (short) %v1242_v18, 128  ;;  %v1244_v23 = vmul.f32 %v5654_v20, %v1236_v21 }
 0x214   : > { %1305 = vxpose.xlu0.b32.cont [2/4] (short) %v1243_v22, 128 }
 0x215   : > { %v5656_v26 = vpop.eup %5655  ;;  %1337 = vxpose.xlu1.b32.cont [2/4] (short) %v1244_v23, 128 }
 0x216   : > { %v5658_v28 = vpop.eup %5657  ;;  %v1245_v29 = vmul.f32 %v5656_v26, %v1237_v24 }
 0x217   : > { %v5660_v30 = vpop.eup %5659  ;;  %v1246_v31 = vmul.f32 %v5658_v28, %v1238_v25 }
 0x218   : > { %v5662_v33 = vpop.eup %5661  ;;  %1306 = vxpose.xlu0.b32.cont [3/4] (short) %v1245_v29, 128  ;;  %v1247_v36 = vmul.f32 %v5660_v30, %v1239_v32  ;;  %v6502_v32 = vld [vmem:[#allocation9 + $0x20] sm:$0xff]  }
 0x219   : > { %1338 = vxpose.xlu1.b32.cont [3/4] (short) %v1246_v31, 128  ;;  %v1248_v37 = vmul.f32 %v5662_v33, %v1240_v34 }
 0x21c   : > { %1307 = vxpose.xlu0.b32.end [4/4] (short) %v1247_v36, 128 }
 0x21d   : > { %1339 = vxpose.xlu1.b32.end [4/4] (short) %v1248_v37, 128 }
 0x26b   : > { %1108 = vperm.xlu1 %5522, %v1058_v44  }
 0x26f   : > { %1118 = vperm.xlu1 %5522, %v1060_v45  }
 0x273   : > { %4098 = vperm.xlu1 %5522, %v1062_v48  }
 0x275   : > { %1103 = vperm.xlu0 %5521, %v1057_v50  }
 0x277   : > { %4108 = vperm.xlu1 %5522, %v1064_v51  }
 0x279   : > { %1113 = vperm.xlu0 %5521, %v1059_v52  }
 0x27d   : > { %4093 = vperm.xlu0 %5521, %v1061_v54  }
 0x281   : > { %4103 = vperm.xlu0 %5521, %v1063_v56  }
 0x290   : > { %v1320_v57 = vpop.trf.xlu0 }
 0x291   : > { %1369 = vst.msk [vmem:[#allocation2 + $0x19] sm:$0xff] %vm894_vm2, %v1320_v57  ;;  %v1352_v58 = vpop.trf.xlu1 }
 0x292   : > { %1385 = vst.msk [vmem:[#allocation2 + $0xd9] sm:$0xff] %vm894_vm2, %v1352_v58 }
 0x294   : > { %v1321_v60 = vpop.trf.xlu0 }
 0x295   : > { %1370 = vst.msk [vmem:[#allocation2 + $0x21] sm:$0xff] %vm894_vm2, %v1321_v60  ;;  %v1353_v61 = vpop.trf.xlu1 }
 0x296   : > { %1386 = vst.msk [vmem:[#allocation2 + $0xe1] sm:$0xff] %vm894_vm2, %v1353_v61 }
 0x298   : > { %v1322_v63 = vpop.trf.xlu0  ;;  %v1455_v4 = vld [vmem:[#allocation2 + $0x19] sm:$0xff] }
 0x299   : > { %1371 = vst.msk [vmem:[#allocation2 + $0x31] sm:$0xff] %vm894_vm2, %v1322_v63  ;;  %v1354_v1 = vpop.trf.xlu1 }
 0x29a   : > { %1387 = vst.msk [vmem:[#allocation2 + $0xf1] sm:$0xff] %vm894_vm2, %v1354_v1 }
 0x29c   : > { %v1323_v3 = vpop.trf.xlu0  ;;  %v1456_v6 = vld [vmem:[#allocation2 + $0x21] sm:$0xff] }
 0x29d   : > { %1372 = vst.msk [vmem:[#allocation2 + $0x39] sm:$0xff] %vm894_vm2, %v1323_v3  ;;  %v6481_v7 = vpack.c.bf16 %v1456_v6, %v1455_v4  ;;  %v1355_v0 = vpop.trf.xlu1 }
 0x29e   : > { %1388 = vst.msk [vmem:[#allocation2 + $0xf9] sm:$0xff] %vm894_vm2, %v1355_v0 }
 0x29f   : > { %4822 = vmatmul.mubr.msk.bf16.vlgmr.msra.gmra.mrb[24].mxu0 %vm894_vm2, %v6481_v7 }
 0x2a0   : > { %v1324_v17 = vpop.trf.xlu0  ;;  %4854 = vmatpush3.bf16.msra.mxu0 %v5619_v47  ;;  %v1457_v20 = vld [vmem:[#allocation2 + $0x31] sm:$0xff] }
 0x2a1   : > { %1373 = vst.msk [vmem:[#allocation2 + $0x49] sm:$0xff] %vm894_vm2, %v1324_v17  ;;  %v1356_v18 = vpop.trf.xlu1  ;;  %4855 = vmatprep.subr.bf16.mxu0 %v5620_v16 }
 0x2a2   : > { %1389 = vst.msk [vmem:[#allocation2 + $0x109] sm:$0xff] %vm894_vm2, %v1356_v18 }
 0x2a4   : > { %v1325_v19 = vpop.trf.xlu0  ;;  %v1458_v21 = vld [vmem:[#allocation2 + $0x39] sm:$0xff]  ;;  %4856 = vmatpush3.bf16.msra.mxu0 %v5620_v16 }
 0x2a5   : > { %1374 = vst.msk [vmem:[#allocation2 + $0x51] sm:$0xff] %vm894_vm2, %v1325_v19  ;;  %v6489_v22 = vpack.c.bf16 %v1458_v21, %v1457_v20  ;;  %v1357_v23 = vpop.trf.xlu1  ;;  %4889 = vmatprep.subr.bf16.mxu0 %v6502_v32  ;;  %v1471_v19 = vld [vmem:[#allocation2 + $0xd9] sm:$0xff]  ;;  %v1472_v20 = vld [vmem:[#allocation2 + $0xe1] sm:$0xff] }
 0x2a6   : > { %1390 = vst.msk [vmem:[#allocation2 + $0x111] sm:$0xff] %vm894_vm2, %v1357_v23  ;;  %v2270_v21 = vld [vmem:[#allocation2 + $0xd8] sm:$0xff]  ;;  %v2271_v23 = vld [vmem:[#allocation2 + $0xe0] sm:$0xff] }
 0x2a7   : > { %4825 = vmatprep.mubr.msk.bf16.mxu0 %vm894_vm2, %v6489_v22 }
 0x2a8   : > { %v1326_v24 = vpop.trf.xlu0  ;;  %v1459_v27 = vld [vmem:[#allocation2 + $0x49] sm:$0xff] }
 0x2a9   : > { %1375 = vst.msk [vmem:[#allocation2 + $0x61] sm:$0xff] %vm894_vm2, %v1326_v24  ;;  %v1358_v25 = vpop.trf.xlu1 }
 0x2aa   : > { %1391 = vst.msk [vmem:[#allocation2 + $0x121] sm:$0xff] %vm894_vm2, %v1358_v25  ;;  %v1473_v25 = vld [vmem:[#allocation2 + $0xf1] sm:$0xff] }
 0x2ac   : > { %v1327_v26 = vpop.trf.xlu0  ;;  %v1460_v28 = vld [vmem:[#allocation2 + $0x51] sm:$0xff] }
 0x2ad   : > { %1376 = vst.msk [vmem:[#allocation2 + $0x69] sm:$0xff] %vm894_vm2, %v1327_v26  ;;  %v6497_v29 = vpack.c.bf16 %v1460_v28, %v1459_v27  ;;  %v1359_v30 = vpop.trf.xlu1  ;;  %v1474_v26 = vld [vmem:[#allocation2 + $0xf9] sm:$0xff] }
 0x2ae   : > { %1392 = vst.msk [vmem:[#allocation2 + $0x129] sm:$0xff] %vm894_vm2, %v1359_v30 }
 0x2af   : > { %4826 = vmatmul.mubr.msk.bf16.gmra.mrb[28].mxu0 %vm894_vm2, %v6497_v29 }
 0x2b0   : > { %v1328_v31 = vpop.trf.xlu0  ;;  %v1461_v35 = vld [vmem:[#allocation2 + $0x61] sm:$0xff] }
 0x2b1   : > { %1377 = vst.msk [vmem:[#allocation2 + $0x79] sm:$0xff] %vm894_vm2, %v1328_v31  ;;  %v1360_v33 = vpop.trf.xlu1 }
 0x2b2   : > { %1393 = vst.msk [vmem:[#allocation2 + $0x139] sm:$0xff] %vm894_vm2, %v1360_v33 }
 0x2b4   : > { %v1329_v34 = vpop.trf.xlu0  ;;  %v1462_v36 = vld [vmem:[#allocation2 + $0x69] sm:$0xff] }
 0x2b5   : > { %1378 = vst.msk [vmem:[#allocation2 + $0x81] sm:$0xff] %vm894_vm2, %v1329_v34  ;;  %v6508_v37 = vpack.c.bf16 %v1462_v36, %v1461_v35  ;;  %v1361_v38 = vpop.trf.xlu1  ;;  %v6545_v34 = vpack.c.bf16 %v1472_v20, %v1471_v19  ;;  %v6547_v35 = vpack.c.bf16 %v2271_v23, %v2270_v21  ;;  %v5618_v36 = vld [vmem:[#allocation9 + $0x48] sm:$0xff]  }
 0x2b6   : > { %1394 = vst.msk [vmem:[#allocation2 + $0x141] sm:$0xff] %vm894_vm2, %v1361_v38  ;;  %v6553_v38 = vpack.c.bf16 %v1474_v26, %v1473_v25  ;;  %v1402_v25 = vld [vmem:[#allocation2 + $0x8] sm:$0xff] }
 0x2b7   : > { %4829 = vmatprep.mubr.msk.bf16.mxu0 %vm894_vm2, %v6508_v37 }
 0x2b8   : > { %v1330_v39 = vpop.trf.xlu0  ;;  %v1463_v45 = vld [vmem:[#allocation2 + $0x79] sm:$0xff] }
 0x2b9   : > { %1379 = vst.msk [vmem:[#allocation2 + $0x91] sm:$0xff] %vm894_vm2, %v1330_v39  ;;  %v1362_v40 = vpop.trf.xlu1  ;;  %v6562_v39 = vld [vmem:[#allocation9 + $0x50] sm:$0xff]  }
 0x2ba   : > { %1395 = vst.msk [vmem:[#allocation2 + $0x151] sm:$0xff] %vm894_vm2, %v1362_v40  ;;  %v2272_v40 = vld [vmem:[#allocation2 + $0xf0] sm:$0xff] }
 0x2bc   : > { %v1331_v44 = vpop.trf.xlu0  ;;  %v1464_v47 = vld [vmem:[#allocation2 + $0x81] sm:$0xff] }
 0x2bd   : > { %1380 = vst.msk [vmem:[#allocation2 + $0x99] sm:$0xff] %vm894_vm2, %v1331_v44  ;;  %v6516_v48 = vpack.c.bf16 %v1464_v47, %v1463_v45  ;;  %v1363_v50 = vpop.trf.xlu1  ;;  %v2273_v44 = vld [vmem:[#allocation2 + $0xf8] sm:$0xff]  ;;  %v1475_v45 = vld [vmem:[#allocation2 + $0x109] sm:$0xff] }
 0x2be   : > { %1396 = vst.msk [vmem:[#allocation2 + $0x159] sm:$0xff] %vm894_vm2, %v1363_v50  ;;  %v1476_v47 = vld [vmem:[#allocation2 + $0x111] sm:$0xff]  ;;  %v2274_v50 = vld [vmem:[#allocation2 + $0x108] sm:$0xff] }
 0x2bf   : > { %4830 = vmatmul.mubr.msk.bf16.gmra.mrb[32].mxu0 %vm894_vm2, %v6516_v48 }
 0x2c0   : > { %v1332_v51 = vpop.trf.xlu0  ;;  %v1465_v56 = vld [vmem:[#allocation2 + $0x91] sm:$0xff] }
 0x2c1   : > { %1381 = vst.msk [vmem:[#allocation2 + $0xa9] sm:$0xff] %vm894_vm2, %v1332_v51  ;;  %v1364_v52 = vpop.trf.xlu1  ;;  %v2275_v51 = vld [vmem:[#allocation2 + $0x110] sm:$0xff] }
 0x2c2   : > { %1397 = vst.msk [vmem:[#allocation2 + $0x169] sm:$0xff] %vm894_vm2, %v1364_v52  ;;  %v1477_v52 = vld [vmem:[#allocation2 + $0x121] sm:$0xff]  ;;  %v2280_v26 = vld [vmem:[#allocation2 + $0x150] sm:$0xff] }
 0x2c4   : > { %v1333_v54 = vpop.trf.xlu0  ;;  %v1466_v57 = vld [vmem:[#allocation2 + $0x99] sm:$0xff] }
 0x2c5   : > { %1382 = vst.msk [vmem:[#allocation2 + $0xb1] sm:$0xff] %vm894_vm2, %v1333_v54  ;;  %v6524_v58 = vpack.c.bf16 %v1466_v57, %v1465_v56  ;;  %v1365_v60 = vpop.trf.xlu1  ;;  %v1478_v54 = vld [vmem:[#allocation2 + $0x129] sm:$0xff]  ;;  %v6564_v56 = vpack.c.bf16 %v2273_v44, %v2272_v40  ;;  %v6566_v57 = vpack.c.bf16 %v1476_v47, %v1475_v45 }
 0x2c6   : > { %1398 = vst.msk [vmem:[#allocation2 + $0x171] sm:$0xff] %vm894_vm2, %v1365_v60  ;;  %v6573_v60 = vpack.c.bf16 %v1478_v54, %v1477_v52  ;;  %v1404_v54 = vld [vmem:[#allocation2 + $0x20] sm:$0xff] }
 0x2c7   : > { %4833 = vmatprep.mubr.msk.bf16.mxu0 %vm894_vm2, %v6524_v58 }
 0x2c8   : > { %v1334_v61 = vpop.trf.xlu0  ;;  %v1467_v1 = vld [vmem:[#allocation2 + $0xa9] sm:$0xff] }
 0x2c9   : > { %1383 = vst.msk [vmem:[#allocation2 + $0xc1] sm:$0xff] %vm894_vm2, %v1334_v61  ;;  %v1366_v63 = vpop.trf.xlu1  ;;  %v2266_v6 = vld [vmem:[#allocation2 + $0xa8] sm:$0xff]  ;;  %v2276_v61 = vld [vmem:[#allocation2 + $0x120] sm:$0xff] }
 0x2ca   : > { %1399 = vst.msk [vmem:[#allocation2 + $0x181] sm:$0xff] %vm894_vm2, %v1366_v63  ;;  %v2277_v63 = vld [vmem:[#allocation2 + $0x128] sm:$0xff] }
 0x2cb   : > { %v6581_v19 = vpack.c.bf16 %v2277_v63, %v2276_v61  ;;  %v1406_v61 = vld [vmem:[#allocation2 + $0x38] sm:$0xff] }
 0x2cc   : > { %v1335_v3 = vpop.trf.xlu0  ;;  %v1468_v4 = vld [vmem:[#allocation2 + $0xb1] sm:$0xff] }
 0x2cd   : > { %v2267_v0 = vld [vmem:[#allocation2 + $0xb0] sm:$0xff]  ;;  %1384 = vst.msk [vmem:[#allocation2 + $0xc9] sm:$0xff] %vm894_vm2, %v1335_v3  ;;  %v6532_v16 = vpack.c.bf16 %v1468_v4, %v1467_v1  ;;  %v1367_v18 = vpop.trf.xlu1  ;;  %v1479_v1 = vld [vmem:[#allocation2 + $0x139] sm:$0xff]  ;;  %v1480_v3 = vld [vmem:[#allocation2 + $0x141] sm:$0xff] }
 0x2ce   : > { %v6534_v17 = vpack.c.bf16 %v2267_v0, %v2266_v6  ;;  %1400 = vst.msk [vmem:[#allocation2 + $0x189] sm:$0xff] %vm894_vm2, %v1367_v18  ;;  %v2278_v4 = vld [vmem:[#allocation2 + $0x138] sm:$0xff]  ;;  %v2279_v6 = vld [vmem:[#allocation2 + $0x140] sm:$0xff]  ;;  %v6583_v20 = vpack.c.bf16 %v1480_v3, %v1479_v1  ;;  %v2283_v40 = vld [vmem:[#allocation2 + $0x170] sm:$0xff] }
 0x2cf   : > { %4834 = vmatmul.mubr.msk.bf16.gmra.mrb[36].mxu0 %vm894_vm2, %v6532_v16  ;;  %v1481_v0 = vld [vmem:[#allocation2 + $0x151] sm:$0xff]  ;;  %v1482_v18 = vld [vmem:[#allocation2 + $0x159] sm:$0xff]  ;;  %v6585_v21 = vpack.c.bf16 %v2279_v6, %v2278_v4 }
 0x2d0   : > { %4941 = vmatprep.mubr.msk.bf16.mxu1 %vm894_vm2, %v6534_v17  ;;  %v1469_v24 = vld [vmem:[#allocation2 + $0xc1] sm:$0xff]  ;;  %v6589_v23 = vpack.c.bf16 %v1482_v18, %v1481_v0  ;;  %v1403_v1 = vld [vmem:[#allocation2 + $0x18] sm:$0xff]  ;;  %v1405_v4 = vld [vmem:[#allocation2 + $0x30] sm:$0xff] }
 0x2d1   : > { %v2268_v28 = vld [vmem:[#allocation2 + $0xc0] sm:$0xff]  ;;  %v6612_v3 = vpack.c.bf16 %v1404_v54, %v1403_v1  ;;  %v5624_v6 = vld [vmem:[#allocation9 + $0x28] sm:$0xff]   ;;  %v6616_v0 = vpack.c.bf16 %v1406_v61, %v1405_v4  ;;  %v1408_v18 = vld [vmem:[#allocation2 + $0x50] sm:$0xff] }
 0x2d2   : > { %v1956_v54 = vld [vmem:[#allocation2 + $0x62] sm:$0xff]  ;;  %v1957_v61 = vld [vmem:[#allocation2 + $0x6a] sm:$0xff]  ;;  %v5626_v4 = vld [vmem:[#allocation9 + $0x68] sm:$0xff]  }
 0x2d4   : > { %v1470_v27 = vld [vmem:[#allocation2 + $0xc9] sm:$0xff] }
 0x2d5   : > { %v2269_v30 = vld [vmem:[#allocation2 + $0xc8] sm:$0xff]  ;;  %v6541_v31 = vpack.c.bf16 %v1470_v27, %v1469_v24  ;;  %v1401_v24 = vld [vmem:[#allocation2] sm:$0xff]  ;;  %v2281_v27 = vld [vmem:[#allocation2 + $0x158] sm:$0xff] }
 0x2d6   : > { %v6543_v33 = vpack.c.bf16 %v2269_v30, %v2268_v28  ;;  %v1483_v28 = vld [vmem:[#allocation2 + $0x169] sm:$0xff]  ;;  %v1484_v30 = vld [vmem:[#allocation2 + $0x171] sm:$0xff]  ;;  %v6597_v44 = vpack.c.bf16 %v2281_v27, %v2280_v26  ;;  %v1433_v45 = vpack.c.bf16 %v1402_v25, %v1401_v24  ;;  %v1409_v27 = vld [vmem:[#allocation2 + $0x60] sm:$0xff] }
 0x2d7   : > { %4837 = vmatprep.mubr.msk.bf16.mxu0 %vm894_vm2, %v6541_v31  ;;  %v6599_v47 = vpack.c.bf16 %v1484_v30, %v1483_v28  ;;  %v2285_v52 = vld [vmem:[#allocation2 + $0x188] sm:$0xff]  ;;  %v1412_v30 = vld [vmem:[#allocation2 + $0x80] sm:$0xff] }
 0x2d8   : > { %4942 = vmatmul.mubr.msk.bf16.vlgmr.msra.gmra.mrb[0].mxu1 %vm894_vm2, %v6543_v33  ;;  %4838 = vmatmul.mubr.msk.bf16.gmra.mrb[40].mxu0 %vm894_vm2, %v6545_v34  ;;  %v1410_v24 = vld [vmem:[#allocation2 + $0x68] sm:$0xff] }
 0x2d9   : > { %4945 = vmatprep.mubr.msk.bf16.mxu1 %vm894_vm2, %v6547_v35  ;;  %4962 = vmatpush3.bf16.msra.mxu1 %v6447_v43  ;;  %v6568_v43 = vpack.c.bf16 %v2275_v51, %v2274_v50  ;;  %v2284_v51 = vld [vmem:[#allocation2 + $0x180] sm:$0xff]  ;;  %v1407_v25 = vld [vmem:[#allocation2 + $0x48] sm:$0xff] }
 0x2da   : > { %4841 = vmatprep.mubr.msk.bf16.mxu0 %vm894_vm2, %v6553_v38  ;;  %4963 = vmatprep.subr.bf16.mxu1 %v5618_v36  ;;  %v6610_v63 = vpack.c.bf16 %v2285_v52, %v2284_v51  ;;  %v6625_v26 = vpack.c.bf16 %v1408_v18, %v1407_v25  ;;  %v5622_v28 = vld [vmem:[#allocation9 + $0x58] sm:$0xff]   ;;  %v1955_v52 = vld [vmem:[#allocation2 + $0x52] sm:$0xff]  ;;  %v1961_v25 = vld [vmem:[#allocation2 + $0x9a] sm:$0xff] }
 0x2db   : > { %v1959_v18 = vld [vmem:[#allocation2 + $0x82] sm:$0xff] }
 0x2dd   : > { %4964 = vmatpush3.bf16.msra.mxu1 %v5618_v36  ;;  %v2282_v36 = vld [vmem:[#allocation2 + $0x168] sm:$0xff] }
 0x2de   : > { %4997 = vmatprep.subr.bf16.mxu1 %v6562_v39  ;;  %v6601_v50 = vpack.c.bf16 %v2283_v40, %v2282_v36  ;;  %v1414_v36 = vld [vmem:[#allocation2 + $0x98] sm:$0xff] }
 0x2df   : > { %v1411_v40 = vld [vmem:[#allocation2 + $0x78] sm:$0xff] }
 0x2e0   : > { %4946 = vmatmul.mubr.msk.bf16.gmra.mrb[4].mxu1 %vm894_vm2, %v6564_v56  ;;  %4842 = vmatmul.mubr.msk.bf16.gmra.mrb[44].mxu0 %vm894_vm2, %v6566_v57 }
 0x2e1   : > { %4949 = vmatprep.mubr.msk.bf16.mxu1 %vm894_vm2, %v6568_v43  ;;  %4845 = vmatprep.mubr.msk.bf16.mxu0 %vm894_vm2, %v6573_v60 }
 0x2e8   : > { %4950 = vmatmul.mubr.msk.bf16.gmra.mrb[8].mxu1 %vm894_vm2, %v6581_v19  ;;  %4846 = vmatmul.mubr.msk.bf16.gmra.mrb[48].mxu0 %vm894_vm2, %v6583_v20 }
 0x2e9   : > { %4953 = vmatprep.mubr.msk.bf16.mxu1 %vm894_vm2, %v6585_v21  ;;  %4849 = vmatprep.mubr.msk.bf16.mxu0 %vm894_vm2, %v6589_v23 }
 0x2f0   : > { %4954 = vmatmul.mubr.msk.bf16.gmra.mrb[12].mxu1 %vm894_vm2, %v6597_v44  ;;  %4850 = vmatmul.mubr.msk.bf16.gmra.mrb[52].mxu0 %vm894_vm2, %v6599_v47 }
 0x2f1   : > { %4957 = vmatprep.mubr.msk.bf16.mxu1 %vm894_vm2, %v6601_v50  ;;  %4857 = vmatprep.mubr.msk.bf16.mxu0 %vm894_vm2, %v1433_v45  ;;  %v1413_v45 = vld [vmem:[#allocation2 + $0x90] sm:$0xff] }
 0x2f2   : > { %v6643_v51 = vpack.c.bf16 %v1414_v36, %v1413_v45  ;;  %v1964_v36 = vld [vmem:[#allocation2 + $0xc2] sm:$0xff] }
 0x2f8   : > { %4958 = vmatmul.mubr.msk.bf16.gmra.mrb[16].mxu1 %vm894_vm2, %v6610_v63  ;;  %4858 = vmatmul.mubr.msk.bf16.vlgmr.msra.gmra.mrb[24].mxu0 %vm894_vm2, %v6612_v3 }
 0x2f9   : > { %4965 = vmatprep.mubr.msk.bf16.mxu1 %vm894_vm2, %v6481_v7  ;;  %4861 = vmatprep.mubr.msk.bf16.mxu0 %vm894_vm2, %v6616_v0  ;;  %v6630_v7 = vpack.c.bf16 %v1410_v24, %v1409_v27  ;;  %v1960_v24 = vld [vmem:[#allocation2 + $0x92] sm:$0xff] }
 0x2fa   : > { %4890 = vmatpush3.bf16.msra.mxu0 %v6502_v32  ;;  %v5625_v32 = vld [vmem:[#allocation9 + $0x60] sm:$0xff]  }
 0x2fb   : > { %4891 = vmatprep.subr.bf16.mxu0 %v5624_v6 }
 0x2fe   : > { %4892 = vmatpush3.bf16.msra.mxu0 %v5624_v6  ;;  %v6707_v6 = vpack.c.bf16 %v1957_v61, %v1956_v54  ;;  %v1974_v61 = vld [vmem:[#allocation2 + $0x13a] sm:$0xff] }
 0x2ff   : > { %4925 = vmatprep.subr.bf16.mxu0 %v6439_v41 }
 0x300   : > { %4966 = vmatmul.mubr.msk.bf16.vlgmr.msra.gmra.mrb[20].mxu1 %vm894_vm2, %v6489_v22  ;;  %4862 = vmatmul.mubr.msk.bf16.gmra.mrb[28].mxu0 %vm894_vm2, %v6625_v26  ;;  %v6639_v22 = vpack.c.bf16 %v1412_v30, %v1411_v40  ;;  %v1963_v30 = vld [vmem:[#allocation2 + $0xb2] sm:$0xff]  ;;  %v1965_v40 = vld [vmem:[#allocation2 + $0xca] sm:$0xff] }
 0x301   : > { %4969 = vmatprep.mubr.msk.bf16.mxu1 %vm894_vm2, %v6497_v29  ;;  %4998 = vmatpush3.bf16.msra.mxu1 %v6562_v39  ;;  %v1948_v29 = vld [vmem:[#allocation2 + $0x2] sm:$0xff]  ;;  %v1953_v39 = vld [vmem:[#allocation2 + $0x3a] sm:$0xff] }
 0x302   : > { %4865 = vmatprep.mubr.msk.bf16.mxu0 %vm894_vm2, %v6630_v7  ;;  %4999 = vmatprep.subr.bf16.mxu1 %v5622_v28 }
 0x305   : > { %5000 = vmatpush3.bf16.msra.mxu1 %v5622_v28  ;;  %v6722_v28 = vpack.c.bf16 %v1961_v25, %v1960_v24 }
 0x306   : > { %5033 = vmatprep.subr.bf16.mxu1 %v5625_v32 }
 0x308   : > { %4970 = vmatmul.mubr.msk.bf16.gmra.mrb[24].mxu1 %vm894_vm2, %v6508_v37  ;;  %4866 = vmatmul.mubr.msk.bf16.gmra.mrb[32].mxu0 %vm894_vm2, %v6639_v22  ;;  %v1949_v37 = vld [vmem:[#allocation2 + $0xa] sm:$0xff] }
 0x309   : > { %4973 = vmatprep.mubr.msk.bf16.mxu1 %vm894_vm2, %v6516_v48  ;;  %4869 = vmatprep.mubr.msk.bf16.mxu0 %vm894_vm2, %v6643_v51  ;;  %v1980_v48 = vpack.c.bf16 %v1949_v37, %v1948_v29  ;;  %v6734_v29 = vpack.c.bf16 %v1965_v40, %v1964_v36  ;;  %v1966_v37 = vld [vmem:[#allocation2 + $0xda] sm:$0xff]  ;;  %v2896_v40 = vld [vmem:[#allocation2 + $0x182] sm:$0xff] }
 0x310   : > { %4974 = vmatmul.mubr.msk.bf16.gmra.mrb[28].mxu1 %vm894_vm2, %v6524_v58  ;;  %4870 = vmatmul.mubr.msk.bf16.gmra.mrb[36].mxu0 %vm894_vm2, %v6534_v17  ;;  %v2590_v58 = vld [vmem:[#allocation2 + $0x181] sm:$0xff] }
 0x311   : > { %4977 = vmatprep.mubr.msk.bf16.mxu1 %vm894_vm2, %v6532_v16  ;;  %4873 = vmatprep.mubr.msk.bf16.mxu0 %vm894_vm2, %v6543_v33  ;;  %v2591_v16 = vld [vmem:[#allocation2 + $0x189] sm:$0xff] }
 0x318   : > { %4978 = vmatmul.mubr.msk.bf16.gmra.mrb[0].mxu1 %vm894_vm2, %v6541_v31  ;;  %4874 = vmatmul.mubr.msk.bf16.gmra.mrb[40].mxu0 %vm894_vm2, %v6547_v35  ;;  %v1950_v31 = vld [vmem:[#allocation2 + $0x1a] sm:$0xff] }
 0x319   : > { %4981 = vmatprep.mubr.msk.bf16.mxu1 %vm894_vm2, %v6545_v34  ;;  %4877 = vmatprep.mubr.msk.bf16.mxu0 %vm894_vm2, %v6564_v56  ;;  %v1951_v34 = vld [vmem:[#allocation2 + $0x22] sm:$0xff] }
 0x320   : > { %4982 = vmatmul.mubr.msk.bf16.gmra.mrb[4].mxu1 %vm894_vm2, %v6553_v38  ;;  %4878 = vmatmul.mubr.msk.bf16.gmra.mrb[44].mxu0 %vm894_vm2, %v6568_v43  ;;  %v1952_v38 = vld [vmem:[#allocation2 + $0x32] sm:$0xff] }
 0x321   : > { %4985 = vmatprep.mubr.msk.bf16.mxu1 %vm894_vm2, %v6566_v57  ;;  %4881 = vmatprep.mubr.msk.bf16.mxu0 %vm894_vm2, %v6581_v19  ;;  %v6690_v57 = vpack.c.bf16 %v2591_v16, %v2590_v58  ;;  %v1968_v58 = vld [vmem:[#allocation2 + $0xf2] sm:$0xff]  ;;  %v1969_v16 = vld [vmem:[#allocation2 + $0xfa] sm:$0xff] }
 0x328   : > { %4986 = vmatmul.mubr.msk.bf16.gmra.mrb[8].mxu1 %vm894_vm2, %v6573_v60  ;;  %4882 = vmatmul.mubr.msk.bf16.gmra.mrb[48].mxu0 %vm894_vm2, %v6585_v21  ;;  %v1981_v60 = vpack.c.bf16 %v1951_v34, %v1950_v31  ;;  %v6746_v34 = vpack.c.bf16 %v1969_v16, %v1968_v58  ;;  %v5628_v58 = vld [vmem:[#allocation9 + $0x78] sm:$0xff]  }
 0x329   : > { %4989 = vmatprep.mubr.msk.bf16.mxu1 %vm894_vm2, %v6583_v20  ;;  %4885 = vmatprep.mubr.msk.bf16.mxu0 %vm894_vm2, %v6597_v44  ;;  %v6694_v20 = vpack.c.bf16 %v1953_v39, %v1952_v38  ;;  %v1970_v38 = vld [vmem:[#allocation2 + $0x10a] sm:$0xff]  ;;  %v1971_v39 = vld [vmem:[#allocation2 + $0x112] sm:$0xff] }
 0x330   : > { %4990 = vmatmul.mubr.msk.bf16.gmra.mrb[12].mxu1 %vm894_vm2, %v6589_v23  ;;  %4886 = vmatmul.mubr.msk.bf16.gmra.mrb[52].mxu0 %vm894_vm2, %v6601_v50  ;;  %v1954_v23 = vld [vmem:[#allocation2 + $0x4a] sm:$0xff] }
 0x331   : > { %4993 = vmatprep.mubr.msk.bf16.mxu1 %vm894_vm2, %v6599_v47  ;;  %4893 = vmatprep.mubr.msk.bf16.mxu0 %vm894_vm2, %v1980_v48  ;;  %v6703_v1 = vpack.c.bf16 %v1955_v52, %v1954_v23  ;;  %v1967_v48 = vld [vmem:[#allocation2 + $0xe2] sm:$0xff]  ;;  %v1973_v23 = vld [vmem:[#allocation2 + $0x12a] sm:$0xff]  ;;  %v6754_v52 = vpack.c.bf16 %v1971_v39, %v1970_v38 }
 0x332   : > { %v6742_v31 = vpack.c.bf16 %v1967_v48, %v1966_v37  ;;  %v2897_v37 = vld [vmem:[#allocation2 + $0x18a] sm:$0xff] }
 0x333   : > { %v6788_v48 = vpack.c.bf16 %v2897_v37, %v2896_v40  ;;  %v3487_v38 = vld [vmem:[#allocation2 + $0x91] sm:$0xff]  ;;  %v3496_v37 = vld [vmem:[#allocation2 + $0xf9] sm:$0xff] }
 0x334   : > { %v3495_v40 = vld [vmem:[#allocation2 + $0xf1] sm:$0xff] }
 0x338   : > { %4994 = vmatmul.mubr.msk.bf16.gmra.mrb[16].mxu1 %vm894_vm2, %v6690_v57  ;;  %4894 = vmatmul.mubr.msk.bf16.vlgmr.msra.gmra.mrb[24].mxu0 %vm894_vm2, %v1981_v60 }
 0x339   : > { %5001 = vmatprep.mubr.msk.bf16.mxu1 %vm894_vm2, %v1981_v60  ;;  %4897 = vmatprep.mubr.msk.bf16.mxu0 %vm894_vm2, %v6694_v20  ;;  %v1972_v60 = vld [vmem:[#allocation2 + $0x122] sm:$0xff] }
 0x33a   : > { %4926 = vmatpush3.bf16.msra.mxu0 %v6439_v41  ;;  %v6715_v41 = vld [vmem:[#allocation9 + $0x70] sm:$0xff]   ;;  %v6758_v54 = vpack.c.bf16 %v1973_v23, %v1972_v60  ;;  %v3490_v60 = vld [vmem:[#allocation2 + $0xb1] sm:$0xff]  ;;  %v3492_v23 = vld [vmem:[#allocation2 + $0xc9] sm:$0xff] }
 0x33b   : > { %4927 = vmatprep.subr.bf16.mxu0 %v6442_v42 }
 0x33e   : > { %4928 = vmatpush3.bf16.msra.mxu0 %v6442_v42  ;;  %v1958_v42 = vld [vmem:[#allocation2 + $0x7a] sm:$0xff] }
 0x33f   : > { %v6717_v27 = vpack.c.bf16 %v1959_v18, %v1958_v42  ;;  %v1976_v42 = vld [vmem:[#allocation2 + $0x152] sm:$0xff]  ;;  %v1977_v18 = vld [vmem:[#allocation2 + $0x15a] sm:$0xff] }
 0x340   : > { %5002 = vmatmul.mubr.msk.bf16.vlgmr.msra.gmra.mrb[20].mxu1 %vm894_vm2, %v6694_v20  ;;  %4898 = vmatmul.mubr.msk.bf16.gmra.mrb[28].mxu0 %vm894_vm2, %v6703_v1  ;;  %v6770_v25 = vpack.c.bf16 %v1977_v18, %v1976_v42  ;;  %v3491_v42 = vld [vmem:[#allocation2 + $0xc1] sm:$0xff] }
 0x341   : > { %5005 = vmatprep.mubr.msk.bf16.mxu1 %vm894_vm2, %v6703_v1  ;;  %5034 = vmatpush3.bf16.msra.mxu1 %v5625_v32  ;;  %v1962_v32 = vld [vmem:[#allocation2 + $0xaa] sm:$0xff]  ;;  %v3517_v18 = vpack.c.bf16 %v3492_v23, %v3491_v42 }
 0x342   : > { %4901 = vmatprep.mubr.msk.bf16.mxu0 %vm894_vm2, %v6707_v6  ;;  %5035 = vmatprep.subr.bf16.mxu1 %v5626_v4  ;;  %v6730_v45 = vpack.c.bf16 %v1963_v30, %v1962_v32  ;;  %v1978_v32 = vld [vmem:[#allocation2 + $0x16a] sm:$0xff]  ;;  %v1979_v30 = vld [vmem:[#allocation2 + $0x172] sm:$0xff] }
 0x343   : > { %v6778_v36 = vpack.c.bf16 %v1979_v30, %v1978_v32  ;;  %v3493_v32 = vld [vmem:[#allocation2 + $0xd9] sm:$0xff]  ;;  %v3494_v30 = vld [vmem:[#allocation2 + $0xe1] sm:$0xff] }
 0x345   : > { %5036 = vmatpush3.bf16.msra.mxu1 %v5626_v4  ;;  %v1975_v4 = vld [vmem:[#allocation2 + $0x142] sm:$0xff] }
 0x346   : > { %5069 = vmatprep.subr.bf16.mxu1 %v6715_v41  ;;  %v6766_v24 = vpack.c.bf16 %v1975_v4, %v1974_v61  ;;  %v3489_v61 = vld [vmem:[#allocation2 + $0xa9] sm:$0xff] }
 0x347   : > { %v3516_v4 = vpack.c.bf16 %v3490_v60, %v3489_v61 }
 0x348   : > { %5006 = vmatmul.mubr.msk.bf16.gmra.mrb[24].mxu1 %vm894_vm2, %v6707_v6  ;;  %4902 = vmatmul.mubr.msk.bf16.gmra.mrb[32].mxu0 %vm894_vm2, %v6717_v27 }
 0x349   : > { %5009 = vmatprep.mubr.msk.bf16.mxu1 %vm894_vm2, %v6717_v27  ;;  %4905 = vmatprep.mubr.msk.bf16.mxu0 %vm894_vm2, %v6722_v28 }
 0x350   : > { %5010 = vmatmul.mubr.msk.bf16.gmra.mrb[28].mxu1 %vm894_vm2, %v6722_v28  ;;  %4906 = vmatmul.mubr.msk.bf16.gmra.mrb[36].mxu0 %vm894_vm2, %v6730_v45 }
 0x351   : > { %5013 = vmatprep.mubr.msk.bf16.mxu1 %vm894_vm2, %v6730_v45  ;;  %4909 = vmatprep.mubr.msk.bf16.mxu0 %vm894_vm2, %v6734_v29 }
 0x358   : > { %5014 = vmatmul.mubr.msk.bf16.gmra.mrb[0].mxu1 %vm894_vm2, %v6734_v29  ;;  %4910 = vmatmul.mubr.msk.bf16.gmra.mrb[40].mxu0 %vm894_vm2, %v6742_v31 }
 0x359   : > { %5017 = vmatprep.mubr.msk.bf16.mxu1 %vm894_vm2, %v6742_v31  ;;  %4913 = vmatprep.mubr.msk.bf16.mxu0 %vm894_vm2, %v6746_v34 }
 0x360   : > { %5018 = vmatmul.mubr.msk.bf16.gmra.mrb[4].mxu1 %vm894_vm2, %v6746_v34  ;;  %4914 = vmatmul.mubr.msk.bf16.gmra.mrb[44].mxu0 %vm894_vm2, %v6754_v52 }
 0x361   : > { %5021 = vmatprep.mubr.msk.bf16.mxu1 %vm894_vm2, %v6754_v52  ;;  %4917 = vmatprep.mubr.msk.bf16.mxu0 %vm894_vm2, %v6758_v54 }
 0x368   : > { %5022 = vmatmul.mubr.msk.bf16.gmra.mrb[8].mxu1 %vm894_vm2, %v6758_v54  ;;  %4918 = vmatmul.mubr.msk.bf16.gmra.mrb[48].mxu0 %vm894_vm2, %v6766_v24 }
 0x369   : > { %5025 = vmatprep.mubr.msk.bf16.mxu1 %vm894_vm2, %v6766_v24  ;;  %4921 = vmatprep.mubr.msk.bf16.mxu0 %vm894_vm2, %v6770_v25 }
 0x370   : > { %5026 = vmatmul.mubr.msk.bf16.gmra.mrb[12].mxu1 %vm894_vm2, %v6770_v25  ;;  %4922 = vmatmul.mubr.msk.bf16.gmra.mrb[52].mxu0 %vm894_vm2, %v6778_v36 }
 0x371   : > { %5029 = vmatprep.mubr.msk.bf16.mxu1 %vm894_vm2, %v6778_v36  ;;  %4929 = vmatprep.mubr.msk.bf16.mxu0 %vm894_vm2, %v6612_v3  ;;  %v5629_v3 = vld [vmem:[#allocation9 + $0x80] sm:$0xff]  }
 0x378   : > { %5030 = vmatmul.mubr.msk.bf16.gmra.mrb[16].mxu1 %vm894_vm2, %v6788_v48  ;;  %4930 = vmatmul.mubr.msk.bf16.vlgmr.msra.gmra.mrb[24].mxu0 %vm894_vm2, %v6616_v0 }
 0x379   : > { %5037 = vmatprep.mubr.msk.bf16.mxu1 %vm894_vm2, %v6616_v0  ;;  %4933 = vmatprep.mubr.msk.bf16.mxu0 %vm894_vm2, %v6625_v26 }
 0x380   : > { %5038 = vmatmul.mubr.msk.bf16.vlgmr.msra.gmra.mrb[20].mxu1 %vm894_vm2, %v6625_v26  ;;  %4934 = vmatmul.mubr.msk.bf16.gmra.mrb[28].mxu0 %vm894_vm2, %v6630_v7  ;;  %v3481_v26 = vld [vmem:[#allocation2 + $0x49] sm:$0xff] }
 0x381   : > { %5041 = vmatprep.mubr.msk.bf16.mxu1 %vm894_vm2, %v6630_v7  ;;  %5070 = vmatpush3.bf16.msra.mxu1 %v6715_v41  ;;  %v3483_v7 = vld [vmem:[#allocation2 + $0x61] sm:$0xff]  ;;  %v3485_v41 = vld [vmem:[#allocation2 + $0x79] sm:$0xff] }
 0x382   : > { %4937 = vmatprep.mubr.msk.bf16.mxu0 %vm894_vm2, %v6639_v22  ;;  %5071 = vmatprep.subr.bf16.mxu1 %v5628_v58 }
 0x385   : > { %5072 = vmatpush3.bf16.msra.mxu1 %v5628_v58  ;;  %v3518_v58 = vpack.c.bf16 %v3494_v30, %v3493_v32 }
 0x386   : > { %5105 = vmatprep.subr.bf16.mxu1 %v5629_v3 }
 0x388   : > { %5042 = vmatmul.mubr.msk.bf16.gmra.mrb[24].mxu1 %vm894_vm2, %v6639_v22  ;;  %4938 = vmatmul.mubr.msk.bf16.gmra.mrb[32].mxu0 %vm894_vm2, %v6643_v51  ;;  %v5630_v22 = vld [vmem:[#allocation9 + $0x88] sm:$0xff]  }
 0x389   : > { %5045 = vmatprep.mubr.msk.bf16.mxu1 %vm894_vm2, %v6643_v51  ;;  %v3488_v51 = vld [vmem:[#allocation2 + $0x99] sm:$0xff] }
 0x38a   : > { %v3515_v39 = vpack.c.bf16 %v3488_v51, %v3487_v38 }
 0x390   : > { %5046 = vmatmul.mubr.msk.bf16.gmra.mrb[28].mxu1 %vm894_vm2, %v6534_v17  ;;  %v3203_v17 = vld [vmem:[#allocation2 + $0x198] sm:$0xff] }
 0x391   : > { %5049 = vmatprep.mubr.msk.bf16.mxu1 %vm894_vm2, %v6543_v33  ;;  %v3204_v33 = vld [vmem:[#allocation2 + $0x1a0] sm:$0xff] }
 0x398   : > { %5050 = vmatmul.mubr.msk.bf16.gmra.mrb[0].mxu1 %vm894_vm2, %v6547_v35  ;;  %v3220_v35 = vpack.c.bf16 %v3204_v33, %v3203_v17  ;;  %v3497_v17 = vld [vmem:[#allocation2 + $0x109] sm:$0xff]  ;;  %v3498_v33 = vld [vmem:[#allocation2 + $0x111] sm:$0xff] }
 0x399   : > { %5053 = vmatprep.mubr.msk.bf16.mxu1 %vm894_vm2, %v6564_v56  ;;  %v3480_v56 = vld [vmem:[#allocation2 + $0x39] sm:$0xff] }
 0x3a0   : > { %5054 = vmatmul.mubr.msk.bf16.gmra.mrb[4].mxu1 %vm894_vm2, %v6568_v43  ;;  %v3479_v43 = vld [vmem:[#allocation2 + $0x31] sm:$0xff] }
 0x3a1   : > { %5057 = vmatprep.mubr.msk.bf16.mxu1 %vm894_vm2, %v6581_v19  ;;  %v3511_v0 = vpack.c.bf16 %v3480_v56, %v3479_v43  ;;  %v3482_v19 = vld [vmem:[#allocation2 + $0x51] sm:$0xff]  ;;  %v3500_v56 = vld [vmem:[#allocation2 + $0x129] sm:$0xff]  ;;  %v3520_v43 = vpack.c.bf16 %v3498_v33, %v3497_v17 }
 0x3a8   : > { %5058 = vmatmul.mubr.msk.bf16.gmra.mrb[8].mxu1 %vm894_vm2, %v6585_v21  ;;  %v3484_v21 = vld [vmem:[#allocation2 + $0x69] sm:$0xff] }
 0x3a9   : > { %5061 = vmatprep.mubr.msk.bf16.mxu1 %vm894_vm2, %v6597_v44  ;;  %v3512_v44 = vpack.c.bf16 %v3482_v19, %v3481_v26  ;;  %v3501_v19 = vld [vmem:[#allocation2 + $0x139] sm:$0xff]  ;;  %v3503_v26 = vld [vmem:[#allocation2 + $0x151] sm:$0xff] }
 0x3b0   : > { %5062 = vmatmul.mubr.msk.bf16.gmra.mrb[12].mxu1 %vm894_vm2, %v6601_v50  ;;  %v3513_v50 = vpack.c.bf16 %v3484_v21, %v3483_v7  ;;  %v3502_v21 = vld [vmem:[#allocation2 + $0x141] sm:$0xff] }
 0x3b1   : > { %5065 = vmatprep.mubr.msk.bf16.mxu1 %vm894_vm2, %v6610_v63  ;;  %v3486_v63 = vld [vmem:[#allocation2 + $0x81] sm:$0xff]  ;;  %v3522_v7 = vpack.c.bf16 %v3502_v21, %v3501_v19 }
 0x3b2   : > { %v3514_v16 = vpack.c.bf16 %v3486_v63, %v3485_v41  ;;  %v3510_v63 = vld [vmem:[#allocation2 + $0x1a1] sm:$0xff] }
 0x3b8   : > { %5066 = vmatmul.mubr.msk.bf16.gmra.mrb[16].mxu1 %vm894_vm2, %v3220_v35  ;;  %v3499_v35 = vld [vmem:[#allocation2 + $0x121] sm:$0xff] }
 0x3b9   : > { %5073 = vmatprep.mubr.msk.bf16.mxu1 %vm894_vm2, %v3511_v0  ;;  %v3521_v0 = vpack.c.bf16 %v3500_v56, %v3499_v35 }
 0x3c0   : > { %5074 = vmatmul.mubr.msk.bf16.vlgmr.msra.gmra.mrb[20].mxu1 %vm894_vm2, %v3512_v44  ;;  %v3504_v44 = vld [vmem:[#allocation2 + $0x159] sm:$0xff] }
 0x3c1   : > { %5077 = vmatprep.mubr.msk.bf16.mxu1 %vm894_vm2, %v3513_v50  ;;  %5106 = vmatpush3.bf16.msra.mxu1 %v5629_v3  ;;  %v3519_v3 = vpack.c.bf16 %v3496_v37, %v3495_v40  ;;  %v3509_v50 = vld [vmem:[#allocation2 + $0x199] sm:$0xff] }
 0x3c2   : > { %5107 = vmatprep.subr.bf16.mxu1 %v5630_v22  ;;  %v3526_v51 = vpack.c.bf16 %v3510_v63, %v3509_v50 }
 0x3c5   : > { %5108 = vmatpush3.bf16.msra.mxu1 %v5630_v22  ;;  %v3523_v22 = vpack.c.bf16 %v3504_v44, %v3503_v26 }
 0x3c8   : > { %5078 = vmatmul.mubr.msk.bf16.gmra.mrb[24].mxu1 %vm894_vm2, %v3514_v16 }
 0x3c9   : > { %5081 = vmatprep.mubr.msk.bf16.mxu1 %vm894_vm2, %v3515_v39 }
 0x3d0   : > { %5082 = vmatmul.mubr.msk.bf16.gmra.mrb[28].mxu1 %vm894_vm2, %v3516_v4 }
 0x3d1   : > { %5085 = vmatprep.mubr.msk.bf16.mxu1 %vm894_vm2, %v3517_v18 }
 0x3d8   : > { %5086 = vmatmul.mubr.msk.bf16.gmra.mrb[0].mxu1 %vm894_vm2, %v3518_v58 }
 0x3d9   : > { %5089 = vmatprep.mubr.msk.bf16.mxu1 %vm894_vm2, %v3519_v3 }
 0x3e0   : > { %5090 = vmatmul.mubr.msk.bf16.gmra.mrb[4].mxu1 %vm894_vm2, %v3520_v43 }
 0x3e1   : > { %5093 = vmatprep.mubr.msk.bf16.mxu1 %vm894_vm2, %v3521_v0 }
 0x3e8   : > { %5094 = vmatmul.mubr.msk.bf16.gmra.mrb[8].mxu1 %vm894_vm2, %v3522_v7 }
 0x3e9   : > { %5097 = vmatprep.mubr.msk.bf16.mxu1 %vm894_vm2, %v3523_v22 }
 0x3f0   : > { %5098 = vmatmul.mubr.msk.bf16.gmra.mrb[12].mxu1 %vm894_vm2, %v6599_v47 }
 0x3f1   : > { %5101 = vmatprep.mubr.msk.bf16.mxu1 %vm894_vm2, %v6690_v57 }
 0x3f8   : > { %5102 = vmatmul.mubr.msk.bf16.gmra.mrb[16].mxu1 %vm894_vm2, %v3526_v51 }
 0x3f9   : > { %5109 = vmatprep.mubr.msk.bf16.mxu1 %vm894_vm2, %v6694_v20 }
 0x400   : > { %5110 = vmatmul.mubr.msk.bf16.vlgmr.msra.gmra.mrb[20].mxu1 %vm894_vm2, %v6703_v1 }
 0x401   : > { %5113 = vmatprep.mubr.msk.bf16.mxu1 %vm894_vm2, %v6707_v6 }
 0x408   : > { %5114 = vmatmul.mubr.msk.bf16.gmra.mrb[24].mxu1 %vm894_vm2, %v6717_v27 }
 0x409   : > { %5117 = vmatprep.mubr.msk.bf16.mxu1 %vm894_vm2, %v6722_v28 }
 0x410   : > { %5118 = vmatmul.mubr.msk.bf16.gmra.mrb[28].mxu1 %vm894_vm2, %v6730_v45 }
 0x411   : > { %5121 = vmatprep.mubr.msk.bf16.mxu1 %vm894_vm2, %v6734_v29  ;;  %v3815_v29 = vld [vmem:[#allocation2 + $0x19a] sm:$0xff] }
 0x418   : > { %5122 = vmatmul.mubr.msk.bf16.gmra.mrb[0].mxu1 %vm894_vm2, %v6742_v31  ;;  %v3816_v31 = vld [vmem:[#allocation2 + $0x1a2] sm:$0xff] }
 0x419   : > { %5125 = vmatprep.mubr.msk.bf16.mxu1 %vm894_vm2, %v6746_v34 }
 0x420   : > { %5126 = vmatmul.mubr.msk.bf16.gmra.mrb[4].mxu1 %vm894_vm2, %v6754_v52  ;;  %v3832_v52 = vpack.c.bf16 %v3816_v31, %v3815_v29 }
 0x421   : > { %5129 = vmatprep.mubr.msk.bf16.mxu1 %vm894_vm2, %v6758_v54 }
 0x423   : > { %v6874_v47 = vpop.f32.mrb[36].mxu0 }
 0x424   : > { %v6876_v57 = vpop.f32.mrb[37].mxu0 }
 0x425   : > { %v6878_v20 = vpop.f32.mrb[38].mxu0 }
 0x426   : > { %v6880_v1 = vpop.f32.mrb[39].mxu0 }
 0x428   : > { %5130 = vmatmul.mubr.msk.bf16.gmra.mrb[8].mxu1 %vm894_vm2, %v6766_v24 }
 0x429   : > { %5133 = vmatprep.mubr.msk.bf16.mxu1 %vm894_vm2, %v6770_v25 }
 0x42b   : > { %v6886_v6 = vpop.f32.mrb[40].mxu0 }
 0x42c   : > { %v6888_v27 = vpop.f32.mrb[41].mxu0 }
 0x42d   : > { %v6890_v28 = vpop.f32.mrb[42].mxu0 }
 0x42e   : > { %v6892_v45 = vpop.f32.mrb[43].mxu0 }
 0x430   : > { %5134 = vmatmul.mubr.msk.bf16.gmra.mrb[12].mxu1 %vm894_vm2, %v6778_v36 }
 0x431   : > { %5137 = vmatprep.mubr.msk.bf16.mxu1 %vm894_vm2, %v6788_v48 }
 0x433   : > { %v6898_v34 = vpop.f32.mrb[44].mxu0 }
 0x434   : > { %v6900_v54 = vpop.f32.mrb[45].mxu0 }
 0x435   : > { %v6902_v24 = vpop.f32.mrb[46].mxu0 }
 0x436   : > { %v6904_v25 = vpop.f32.mrb[47].mxu0 }
 0x438   : > { %5138 = vmatmul.mubr.msk.bf16.gmra.mrb[16].mxu1 %vm894_vm2, %v3832_v52 }
 0x43b   : > { %v6907_v41 = vpop.f32.mrb[48].mxu0 }
 0x43c   : > { %v6909_v16 = vpop.f32.mrb[49].mxu0 }
 0x43d   : > { %v6911_v36 = vpop.f32.mrb[50].mxu0 }
 0x43e   : > { %v6913_v48 = vpop.f32.mrb[51].mxu0 }
 0x443   : > { %v6915_v38 = vpop.f32.mrb[52].mxu0 }
 0x444   : > { %v6917_v39 = vpop.f32.mrb[53].mxu0 }
 0x445   : > { %v6919_v60 = vpop.f32.mrb[54].mxu0 }
 0x446   : > { %v6921_v23 = vpop.f32.mrb[55].mxu0 }
 0x44b   : > { %v4931_v61 = vpop.f32.mrb[24].mxu0 }
 0x44c   : > { %v2401_v4 = vpop.f32.mrb[25].mxu0 }
 0x44d   : > { %v4932_v42 = vpop.f32.mrb[26].mxu0 }
 0x44e   : > { %v2404_v18 = vpop.f32.mrb[27].mxu0 }
 0x453   : > { %v4935_v32 = vpop.f32.mrb[28].mxu0 }
 0x454   : > { %v2417_v30 = vpop.f32.mrb[29].mxu0 }
 0x455   : > { %v4936_v40 = vpop.f32.mrb[30].mxu0 }
 0x456   : > { %v2420_v37 = vpop.f32.mrb[31].mxu0 }
 0x45b   : > { %v4939_v58 = vpop.f32.mrb[32].mxu0 }
 0x45c   : > { %v2433_v3 = vpop.f32.mrb[33].mxu0 }
 0x45d   : > { %v4940_v17 = vpop.f32.mrb[34].mxu0 }
 0x45e   : > { %v2436_v33 = vpop.f32.mrb[35].mxu0 }
 0x4d3   : > { %v5111_v35 = vpop.f32.mrb[20].mxu1 }
 0x4d4   : > { %v5145_v56 = vadd.f32 %v5111_v35, %v4931_v61  ;;  %v3932_v43 = vpop.f32.mrb[21].mxu1 }
 0x4d5   : > { %v5146_v0 = vadd.f32 %v3932_v43, %v2401_v4  ;;  %v5112_v19 = vpop.f32.mrb[22].mxu1 }
 0x4d6   : > { %v5147_v21 = vadd.f32 %v5112_v19, %v4932_v42  ;;  %v3935_v26 = vpop.f32.mrb[23].mxu1 }
 0x4d7   : > { %v5148_v44 = vadd.f32 %v3935_v26, %v2404_v18  ;;  %4119 = vxpose.xlu0.b32.start [1/16] (narrow) %v5146_v0, 32 }
 0x4db   : > { %v5115_v7 = vpop.f32.mrb[24].mxu1  ;;  %4120 = vxpose.xlu0.b32.cont [2/16] (narrow) %v5148_v44, 32 }
 0x4dc   : > { %v5149_v22 = vadd.f32 %v5115_v7, %v4935_v32  ;;  %v3948_v50 = vpop.f32.mrb[25].mxu1 }
 0x4dd   : > { %v5150_v63 = vadd.f32 %v3948_v50, %v2417_v30  ;;  %v5116_v51 = vpop.f32.mrb[26].mxu1 }
 0x4de   : > { %v5151_v29 = vadd.f32 %v5116_v51, %v4936_v40  ;;  %v3951_v31 = vpop.f32.mrb[27].mxu1 }
 0x4df   : > { %v5152_v52 = vadd.f32 %v3951_v31, %v2420_v37  ;;  %4121 = vxpose.xlu0.b32.cont [3/16] (narrow) %v5145_v56, 32 }
 0x4e3   : > { %v5119_v15 = vpop.f32.mrb[28].mxu1  ;;  %4122 = vxpose.xlu0.b32.cont [4/16] (narrow) %v5147_v21, 32 }
 0x4e4   : > { %v5153_v61 = vadd.f32 %v5119_v15, %v4939_v58  ;;  %v3964_v35 = vpop.f32.mrb[29].mxu1 }
 0x4e5   : > { %v5154_v4 = vadd.f32 %v3964_v35, %v2433_v3  ;;  %v5120_v43 = vpop.f32.mrb[30].mxu1 }
 0x4e6   : > { %v5155_v42 = vadd.f32 %v5120_v43, %v4940_v17  ;;  %v3967_v19 = vpop.f32.mrb[31].mxu1 }
 0x4e7   : > { %v5156_v18 = vadd.f32 %v3967_v19, %v2436_v33  ;;  %4123 = vxpose.xlu0.b32.cont [5/16] (narrow) %v5150_v63, 32 }
 0x4eb   : > { %v5123_v0 = vpop.f32.mrb[0].mxu1  ;;  %4124 = vxpose.xlu0.b32.cont [6/16] (narrow) %v5152_v52, 32 }
 0x4ec   : > { %v5157_v32 = vadd.f32 %v5123_v0, %v6874_v47  ;;  %v3980_v30 = vpop.f32.mrb[1].mxu1 }
 0x4ed   : > { %v5158_v40 = vadd.f32 %v3980_v30, %v6876_v57  ;;  %v5124_v26 = vpop.f32.mrb[2].mxu1 }
 0x4ee   : > { %v5159_v37 = vadd.f32 %v5124_v26, %v6878_v20  ;;  %v3983_v56 = vpop.f32.mrb[3].mxu1 }
 0x4ef   : > { %v5160_v15 = vadd.f32 %v3983_v56, %v6880_v1  ;;  %4125 = vxpose.xlu0.b32.cont [7/16] (narrow) %v5149_v22, 32 }
 0x4f3   : > { %v5127_v58 = vpop.f32.mrb[4].mxu1  ;;  %4126 = vxpose.xlu0.b32.cont [8/16] (narrow) %v5151_v29, 32 }
 0x4f4   : > { %v5161_v3 = vadd.f32 %v5127_v58, %v6886_v6  ;;  %v3996_v17 = vpop.f32.mrb[5].mxu1 }
 0x4f5   : > { %v5162_v33 = vadd.f32 %v3996_v17, %v6888_v27  ;;  %v5128_v21 = vpop.f32.mrb[6].mxu1 }
 0x4f6   : > { %v5163_v47 = vadd.f32 %v5128_v21, %v6890_v28  ;;  %v3999_v44 = vpop.f32.mrb[7].mxu1 }
 0x4f7   : > { %v5164_v57 = vadd.f32 %v3999_v44, %v6892_v45  ;;  %4151 = vxpose.xlu1.b32.start [1/16] (narrow) %v5162_v33, 32  ;;  %4127 = vxpose.xlu0.b32.cont [9/16] (narrow) %v5154_v4, 32 }
 0x4fb   : > { %v5131_v20 = vpop.f32.mrb[8].mxu1  ;;  %4152 = vxpose.xlu1.b32.cont [2/16] (narrow) %v5164_v57, 32  ;;  %4128 = vxpose.xlu0.b32.cont [10/16] (narrow) %v5156_v18, 32 }
 0x4fc   : > { %v5165_v1 = vadd.f32 %v5131_v20, %v6898_v34  ;;  %v4012_v7 = vpop.f32.mrb[9].mxu1 }
 0x4fd   : > { %v5166_v22 = vadd.f32 %v4012_v7, %v6900_v54  ;;  %v5132_v6 = vpop.f32.mrb[10].mxu1 }
 0x4fe   : > { %v5167_v50 = vadd.f32 %v5132_v6, %v6902_v24  ;;  %v4015_v27 = vpop.f32.mrb[11].mxu1 }
 0x4ff   : > { %v5168_v63 = vadd.f32 %v4015_v27, %v6904_v25  ;;  %4153 = vxpose.xlu1.b32.cont [3/16] (narrow) %v5161_v3, 32  ;;  %4129 = vxpose.xlu0.b32.cont [11/16] (narrow) %v5153_v61, 32  ;;  %v5695_v27 = vld [vmem:[%s6183_s10] sm:$0xff] }
 0x503   : > { %v5135_v28 = vpop.f32.mrb[12].mxu1  ;;  %4154 = vxpose.xlu1.b32.cont [4/16] (narrow) %v5163_v47, 32  ;;  %4130 = vxpose.xlu0.b32.cont [12/16] (narrow) %v5155_v42, 32 }
 0x504   : > { %v5169_v45 = vadd.f32 %v5135_v28, %v6907_v41  ;;  %v4028_v51 = vpop.f32.mrb[13].mxu1 }
 0x505   : > { %v5170_v29 = vadd.f32 %v4028_v51, %v6909_v16  ;;  %v5136_v34 = vpop.f32.mrb[14].mxu1 }
 0x506   : > { %v5171_v31 = vadd.f32 %v5136_v34, %v6911_v36  ;;  %v4031_v54 = vpop.f32.mrb[15].mxu1  ;;  %v1104_v36 = vpop.permute.xlu0 %1103 }
 0x507   : > { %v5172_v52 = vadd.f32 %v4031_v54, %v6913_v48  ;;  %4155 = vxpose.xlu1.b32.cont [5/16] (narrow) %v5166_v22, 32  ;;  %4131 = vxpose.xlu0.b32.cont [13/16] (narrow) %v5158_v40, 32  ;;  %v1129_v48 = vadd.f32 %v1104_v36, %v6306_v46  ;;  %v1130_v3 = vadd.f32 %v1104_v36, %v6308_v49 }
 0x509   : > { %v4479_v57 = vmul.f32 -1.442695, %v1130_v3 }
 0x50b   : > { %v5139_v24 = vpop.f32.mrb[16].mxu1  ;;  %4156 = vxpose.xlu1.b32.cont [6/16] (narrow) %v5168_v63, 32  ;;  %4132 = vxpose.xlu0.b32.cont [14/16] (narrow) %v5160_v15, 32 }
 0x50c   : > { %v5173_v25 = vadd.f32 %v5139_v24, %v6915_v38  ;;  %v4044_v61 = vpop.f32.mrb[17].mxu1  ;;  %v1109_v38 = vpop.permute.xlu1 %1108  ;;  %v5696_v24 = vld [vmem:[%s6183_s10 + $0x10] sm:$0xff] }
 0x50d   : > { %v5174_v35 = vadd.f32 %v4044_v61, %v6917_v39  ;;  %v5140_v41 = vpop.f32.mrb[18].mxu1  ;;  %v1131_v39 = vadd.f32 %v1109_v38, %v6382_v53  ;;  %v1132_v21 = vadd.f32 %v1109_v38, %v6384_v55 }
 0x50e   : > { %v5175_v4 = vadd.f32 %v5140_v41, %v6919_v60  ;;  %v4047_v16 = vpop.f32.mrb[19].mxu1  ;;  %v4478_v60 = vmul.f32 -1.442695, %v1129_v48  ;;  %v5697_v48 = vld [vmem:[%s6183_s10 + $0x20] sm:$0xff] }
 0x50f   : > { %v5176_v43 = vadd.f32 %v4047_v16, %v6921_v23  ;;  %4157 = vxpose.xlu1.b32.cont [7/16] (narrow) %v5165_v1, 32  ;;  %4133 = vxpose.xlu0.b32.cont [15/16] (narrow) %v5157_v32, 32  ;;  %v1114_v23 = vpop.permute.xlu0 %1113  ;;  %v4480_v42 = vmul.f32 -1.442695, %v1131_v39  ;;  %v4481_v6 = vmul.f32 -1.442695, %v1132_v21 }
 0x510   : > { %5663 = vpow2.f32 %v4478_v60  ;;  %v1133_v19 = vadd.f32 %v1114_v23, %v6386_v59  ;;  %v1119_v18 = vpop.permute.xlu1 %1118 }
 0x511   : > { %5665 = vpow2.f32 %v4480_v42  ;;  %v1135_v0 = vadd.f32 %v1119_v18, %v6390_v2 }
 0x512   : > { %v4482_v32 = vmul.f32 -1.442695, %v1133_v19 }
 0x513   : > { %4158 = vxpose.xlu1.b32.cont [8/16] (narrow) %v5167_v50, 32  ;;  %4134 = vxpose.xlu0.b32.end [16/16] (narrow) %v5159_v37, 32  ;;  %v4484_v30 = vmul.f32 -1.442695, %v1135_v0  ;;  %v6947_v53 = vpop.permute.xlu0 %4093  ;;  %v1134_v50 = vadd.f32 %v1114_v23, %v6388_v62 }
 0x514   : > { %5667 = vpow2.f32 %v4482_v32  ;;  %v4111_v17 = vadd.f32 %v6947_v53, %v6290_v8  ;;  %v6955_v47 = vpop.permute.xlu1 %4098  ;;  %v4112_v3 = vadd.f32 %v6947_v53, %v6292_v9 }
 0x515   : > { %5669 = vpow2.f32 %v4484_v30  ;;  %v4113_v1 = vadd.f32 %v6955_v47, %v6294_v10  ;;  %v4114_v21 = vadd.f32 %v6955_v47, %v6296_v11  ;;  %v5700_v11 = vld [vmem:[%s6183_s10 + $0x18] sm:$0xff] }
 0x517   : > { %4159 = vxpose.xlu1.b32.cont [9/16] (narrow) %v5170_v29, 32  ;;  %v6949_v59 = vpop.permute.xlu0 %4103 }
 0x518   : > { %v6964_v54 = vpop.permute.xlu1 %4108  ;;  %v4116_v9 = vadd.f32 %v6949_v59, %v6300_v13 }
 0x51a   : > { %v5664_v40 = vpop.eup %5663 }
 0x51b   : > { %4160 = vxpose.xlu1.b32.cont [10/16] (narrow) %v5172_v52, 32  ;;  %v1209_v26 = vadd.f32 1.0, %v5664_v40  ;;  %v5666_v46 = vpop.eup %5665  ;;  %v4483_v52 = vmul.f32 -1.442695, %v1134_v50 }
 0x51c   : > { %v1211_v37 = vadd.f32 1.0, %v5666_v46 }
 0x51d   : > { %5671 = vrcp.f32 %v1209_v26 }
 0x51e   : > { %v5668_v56 = vpop.eup %5667  ;;  %5673 = vrcp.f32 %v1211_v37 }
 0x51f   : > { %4161 = vxpose.xlu1.b32.cont [11/16] (narrow) %v5169_v45, 32  ;;  %v1213_v15 = vadd.f32 1.0, %v5668_v56  ;;  %v5670_v58 = vpop.eup %5669  ;;  %v4115_v45 = vadd.f32 %v6949_v59, %v6298_v12 }
 0x520   : > { %v1215_v2 = vadd.f32 1.0, %v5670_v58 }
 0x521   : > { %5675 = vrcp.f32 %v1213_v15 }
 0x522   : > { %5677 = vrcp.f32 %v1215_v2 }
 0x523   : > { %4162 = vxpose.xlu1.b32.cont [12/16] (narrow) %v5171_v31, 32  ;;  %5679 = vpow2.f32 %v4479_v57  ;;  %v1136_v31 = vadd.f32 %v1119_v18, %v6393_v5 }
 0x524   : > { %5681 = vpow2.f32 %v4481_v6 }
 0x525   : > { %5683 = vpow2.f32 %v4483_v52 }
 0x527   : > { %4163 = vxpose.xlu1.b32.cont [13/16] (narrow) %v5174_v35, 32  ;;  %v5672_v33 = vpop.eup %5671  ;;  %v4117_v35 = vadd.f32 %v6964_v54, %v6302_v14  ;;  %v5698_v14 = vld [vmem:[%s6183_s10 + $0x30] sm:$0xff] }
 0x528   : > { %v4207_v7 = vsub.f32 1.0, %v5672_v33  ;;  %v5674_v22 = vpop.eup %5673  ;;  %v4199_v55 = vmul.f32 %v5695_v27, %v5672_v33 }
 0x529   : > { %v4209_v29 = vsub.f32 1.0, %v5674_v22  ;;  %v4201_v12 = vmul.f32 %v5696_v24, %v5674_v22 }
 0x52b   : > { %4164 = vxpose.xlu1.b32.cont [14/16] (narrow) %v5176_v43, 32  ;;  %v5676_v34 = vpop.eup %5675  ;;  %v4485_v43 = vmul.f32 -1.442695, %v1136_v31  ;;  %v5701_v31 = vld [vmem:[%s6183_s10 + $0x28] sm:$0xff] }
 0x52c   : > { %v4211_v5 = vsub.f32 1.0, %v5676_v34  ;;  %v5678_v16 = vpop.eup %5677  ;;  %v4203_v38 = vmul.f32 %v5697_v48, %v5676_v34 }
 0x52d   : > { %v5680_v23 = vpop.eup %5679  ;;  %v4213_v19 = vsub.f32 1.0, %v5678_v16  ;;  %5685 = vpow2.f32 %v4485_v43  ;;  %v4205_v0 = vmul.f32 %v5698_v14, %v5678_v16 }
 0x52e   : > { %v5682_v30 = vpop.eup %5681  ;;  %v1210_v40 = vadd.f32 1.0, %v5680_v23 }
 0x52f   : > { %4165 = vxpose.xlu1.b32.cont [15/16] (narrow) %v5173_v25, 32  ;;  %v1212_v46 = vadd.f32 1.0, %v5682_v30  ;;  %v5684_v37 = vpop.eup %5683 }
 0x530   : > { %5687 = vrcp.f32 %v1210_v40  ;;  %v1214_v56 = vadd.f32 1.0, %v5684_v37 }
 0x531   : > { %5689 = vrcp.f32 %v1212_v46 }
 0x532   : > { %5691 = vrcp.f32 %v1214_v56 }
 0x533   : > { %4166 = vxpose.xlu1.b32.end [16/16] (narrow) %v5175_v4, 32 }
 0x537   : > { %v5686_v15 = vpop.eup %5685 }
 0x538   : > { %v1216_v58 = vadd.f32 1.0, %v5686_v15 }
 0x53a   : > { %v5688_v2 = vpop.eup %5687  ;;  %5693 = vrcp.f32 %v1216_v58 }
 0x557   : > { %v4135_v44 = vpop.trf.xlu0 }
 0x558   : > { %v4183_v20 = vadd.f32 %v4135_v44, %v4111_v17  ;;  %v4208_v44 = vsub.f32 1.0, %v5688_v2 }
 0x55a   : > { %v4191_v49 = vmax.f32 %v4183_v20, 0.0  ;;  %v5690_v20 = vpop.eup %5689 }
 0x55b   : > { %v4136_v8 = vpop.trf.xlu0  ;;  %v4210_v50 = vsub.f32 1.0, %v5690_v20  ;;  %v5692_v27 = vpop.eup %5691  ;;  %v4202_v47 = vmul.f32 %v5700_v11, %v5690_v20 }
 0x55c   : > { %v4215_v63 = vmul.f32 %v4207_v7, %v4191_v49  ;;  %v4185_v28 = vadd.f32 %v4136_v8, %v4113_v1  ;;  %v5699_v7 = vld [vmem:[%s6183_s10 + $0x8] sm:$0xff]  ;;  %v4212_v13 = vsub.f32 1.0, %v5692_v27 }
 0x55d   : > { %v4200_v49 = vmul.f32 %v5699_v7, %v5688_v2 }
 0x55e   : > { %v4223_v51 = vadd.f32 %v4215_v63, %v4199_v55  ;;  %v4193_v10 = vmax.f32 %v4185_v28, 0.0 }
 0x55f   : > { %v4137_v62 = vpop.trf.xlu0 }
 0x560   : > { %4231 = vst [vmem:[%s6968_s22] sm:$0xff] %v4223_v51  ;;  %v4217_v25 = vmul.f32 %v4209_v29, %v4193_v10  ;;  %v4187_v61 = vadd.f32 %v4137_v62, %v4115_v45  ;;  %v7080_v45 = vld [vmem:[#allocation19_spill] sm:$0xff]  ;;  %v5694_v10 = vpop.eup %5693  ;;  %v4204_v62 = vmul.f32 %v5701_v31, %v5692_v27 }
 0x561   : > { %v4118_v51 = vadd.f32 %v6964_v54, %v7080_v45  ;;  %v5702_v54 = vld [vmem:[%s6183_s10 + $0x38] sm:$0xff]  ;;  %s5823_s10 = sshll.u32 %s5913_s28, 4  ;;  %s5824_s10 = int_to_ptr.vmem [resolvable:$false] %s5823_s10 }
 0x562   : > { %v4225_v41 = vadd.f32 %v4217_v25, %v4201_v12  ;;  %v4195_v4 = vmax.f32 %v4187_v61, 0.0  ;;  %v4214_v61 = vsub.f32 1.0, %v5694_v10  ;;  %s5825_s19 = scalar_lea.vmem %s5824_s10, 2048  ;;  %p5826_p7 = scmp.lt.s32.totalorder %s7001_s23, %s5824_s10 }
 0x563   : > { %v4138_v36 = vpop.trf.xlu0  ;;  %p5827_p3 = scmp.lt.s32.totalorder %s5825_s19, %s5819_s30 }
 0x564   : > { %4233 = vst [vmem:[%s6968_s22 + $0x10] sm:$0xff] %v4225_v41  ;;  %v4219_v39 = vmul.f32 %v4211_v5, %v4195_v4  ;;  %v4189_v60 = vadd.f32 %v4138_v36, %v4117_v35  ;;  %v4206_v35 = vmul.f32 %v5702_v54, %v5694_v10 }
 0x565   : > { %p5828_p5 = por %p5827_p3, %p5826_p7 }
 0x566   : > { %v4227_v42 = vadd.f32 %v4219_v39, %v4203_v38  ;;  %v4197_v18 = vmax.f32 %v4189_v60, 0.0 }
 0x567   : > { %p5829_p9 = pnand %p5828_p5, %p5822_p4 }
 0x568   : > { %4235 = vst [vmem:[%s6968_s22 + $0x20] sm:$0xff] %v4227_v42  ;;  %v4221_v32 = vmul.f32 %v4213_v19, %v4197_v18 }
 0x56a   : > { %v4229_v26 = vadd.f32 %v4221_v32, %v4205_v0 }
 0x56c   : > { %4237 = vst [vmem:[%s6968_s22 + $0x30] sm:$0xff] %v4229_v26 }
 0x577   : > { %v4167_v17 = vpop.trf.xlu1 }
 0x578   : > { %v4184_v33 = vadd.f32 %v4167_v17, %v4112_v3 }
 0x57a   : > { %v4192_v57 = vmax.f32 %v4184_v33, 0.0 }
 0x57b   : > { %v4168_v1 = vpop.trf.xlu1 }
 0x57c   : > { %v4216_v22 = vmul.f32 %v4208_v44, %v4192_v57  ;;  %v4186_v6 = vadd.f32 %v4168_v1, %v4114_v21 }
 0x57e   : > { %v4224_v53 = vadd.f32 %v4216_v22, %v4200_v49  ;;  %v4194_v8 = vmax.f32 %v4186_v6, 0.0 }
 0x57f   : > { %v4169_v55 = vpop.trf.xlu1 }
 0x580   : > { %4232 = vst [vmem:[%s6968_s22 + $0x8] sm:$0xff] %v4224_v53  ;;  %v4218_v63 = vmul.f32 %v4210_v50, %v4194_v8  ;;  %v4188_v28 = vadd.f32 %v4169_v55, %v4116_v9 }
 0x582   : > { %v4226_v29 = vadd.f32 %v4218_v63, %v4202_v47  ;;  %v4196_v59 = vmax.f32 %v4188_v28, 0.0 }
 0x583   : > { %v4170_v34 = vpop.trf.xlu1 }
 0x584   : > { %4234 = vst [vmem:[%s6968_s22 + $0x18] sm:$0xff] %v4226_v29  ;;  %v4220_v52 = vmul.f32 %v4212_v13, %v4196_v59  ;;  %v4190_v24 = vadd.f32 %v4170_v34, %v4118_v51 }
 0x586   : > { %v4228_v12 = vadd.f32 %v4220_v52, %v4204_v62  ;;  %v4198_v25 = vmax.f32 %v4190_v24, 0.0 }
 0x588   : > { %4236 = vst [vmem:[%s6968_s22 + $0x28] sm:$0xff] %v4228_v12  ;;  %v4222_v41 = vmul.f32 %v4214_v61, %v4198_v25 }
 0x58a   : > { %v4230_v5 = vadd.f32 %v4222_v41, %v4206_v35 }
 0x58c   : > { %4238 = vst [vmem:[%s6968_s22 + $0x38] sm:$0xff] %v4230_v5 }
 0x58d   : > { %5832 = shalt.err (!%p5829_p9)
}
 0x58e   : > { %s5833_s29 = scalar_lea.hbm %s6999_s9, 1024  ;;  %s5837_s1 = scalar_lea.hbm %s7053_s7, 2048 }
 0x58f   : > { %p5834_p0 = scmp.ne.s32.totalorder %s6999_s9, %s5833_s29  ;;  %p5838_p1 = scmp.lt.u32.totalorder %s6999_s9, %s7053_s7 }
 0x590   : > { %p5839_p12 = scmp.lt.u32.totalorder %s5837_s1, %s5833_s29  ;;  %p5841_p13 = scmp.lt.u32.totalorder %s5833_s29, %s6999_s9 }
 0x591   : > { %p5835_p8 = pnand %p5834_p0, %p7081_p6 }
 0x592   : > { %p5840_p2 = por %p5839_p12, %p5838_p1 }
 0x593   : > { %p5836_p11 = pneg %p5835_p8 }
 0x594   : > { %p5842_p10 = por %p5841_p13, %p5840_p2 }
 0x596   : > { %p5843_p4 = pnand %p5842_p10, %p5836_p11 }
 0x598   : > { %5846 = shalt.err (!%p5843_p4)
}
 0x599   : > { %s5914_s11 = smov 256   ;;  %s5915_s26 = smov 16  }
 0x59a   : > { %5449 = dma.vmem_to_hbm [thread:$0]  (%p7081_p6), %s7001_s23, 1024, %s6999_s9, %s4240_s20, %s5914_s11, %s5914_s11, %s5915_s26  }
 0x59b PF: > { %s4268_s22 = sand.u32 1, %s5885_s24   ;;  %p7082_p7 = scmp.ne.s32.totalorder %s7063_s8, 0 }
 0x59c   : > { %p7083_p3 = scmp.ge.s32.totalorder %s5897_s27, 2  ;;  %s4269_s17 = scalar_lea.sflag [#allocation5], %s4268_s22 }
 0x59e   : > { %p5466_p5 = pnand %p7083_p3, %p7082_p7 }
 0x5a0   : > { %5880 = dma.done.wait (!%p5466_p5), %s4269_s17, 1024  }
 0x5a1   : > { %5882 = vsyncadd (!%p5466_p5), %s4269_s17, 4294966272  ;;  %s7084_s4 = sld [smem:[#allocation17_spill]]  ;;  %s7085_s26 = sld [smem:[#allocation18_spill]] }
 0x5a2   : > { %p24_p9 = scmp.ge.s32.totalorder %s6066_s13, 4   ;;  %s7086_s24 = smov %s5889_s25 }
 0x5a3   : > { %s7088_s27 = smov %s6066_s13 }
 0x5a4   :  { %26 = sbr.rel (!%p24_p9) target bundleno = 12 (0xc), region = 127 }
 0x5a7   : > { %s7087_s25 = smov %s7084_s4 }
 0x5ab   :  { %4274 = vsyncpa [#allocation4], 1 }
 0x5ac   :  { %4276 = vsyncpa [#allocation4 + $0x1], 1 }
 0x5ad   :  { %4277 = vsyncpa [#allocation7], 1 }
 0x5ae   :  { %4279 = vsyncpa [#allocation7 + $0x1], 1 }
 0x5af   :  { %4280 = vsyncpa [#allocation10], 1 }
 0x5b0   :  { %4281 = vsyncpa [#allocation5], 1 }
 0x5b1   :  { %4283 = vsyncpa [#allocation5 + $0x1], 1 }

</bundles_post_ra>
